<compile_context>
chip_gen: v7x
topology: tpu7x:2x2x1
jax: 0.10.0
libtpu: 0.0.40
codegen_flags: <defaults>
</compile_context>

<pallas_src>
import functools

import jax
import jax.numpy as jnp
from jax.experimental import pallas as pl
from jax.experimental.pallas import tpu as pltpu


def _ctg_kernel(x_ref, w_ref, a_ref, bav_ref, o_ref, bd_ref, ba_ref, *,
                K, C_out, V, t_tile, mxu_dtype, aggregate_first):
    """One (n, t_tile) block of the fused 1x1 conv + graph aggregation."""

    # Build the per-sample block-diagonal adjacency Bd_k = I_{t_tile} (x) A[n,k]
    # and the post-aggregation bias tile once per sample (tt == 0; tt is the
    # innermost, sequential grid axis so these scratch buffers stay valid for
    # every T tile of the current sample).
    @pl.when(pl.program_id(1) == 0)
    def _build_per_sample():
        a = a_ref[0].astype(mxu_dtype)             # (K, V, V)
        bav = bav_ref[0]                           # (C_out, V) fp32
        bd_ref[...] = jnp.zeros_like(bd_ref)
        for f in range(t_tile):                    # static & small (<= ~16)
            lo, hi = f * V, (f + 1) * V
            ba_ref[:, lo:hi] = bav
            for k in range(K):                     # K tiny & static (<= 3)
                bd_ref[k, lo:hi, lo:hi] = a[k]

    x = x_ref[0].astype(mxu_dtype)                 # (C_in, TtV); in-kernel cast
    acc = ba_ref[...]                              # fp32 (C_out, TtV), bias included
    for k in range(K):
        if aggregate_first:
            # graph-aggregate on C_in rows, then 1x1 conv (cheaper when C_in <= C_out)
            y = jnp.dot(x, bd_ref[k], preferred_element_type=jnp.float32)
            acc = acc + jnp.dot(w_ref[k], y.astype(mxu_dtype),
                                preferred_element_type=jnp.float32)
        else:
            # 1x1 conv first, then graph-aggregate on C_out rows
            z = jnp.dot(w_ref[k], x, preferred_element_type=jnp.float32)
            acc = acc + jnp.dot(z.astype(mxu_dtype), bd_ref[k],
                                preferred_element_type=jnp.float32)

    o_ref[0] = acc.astype(o_ref.dtype)             # single lane-dense full-block store


def _lane_target():
    """~One MXU contraction pass of lanes: 128 on v5 and older, 256 on v6e/v7x."""
    try:
        kind = jax.devices()[0].device_kind.lower()
    except Exception:
        return 256
    return 128 if any(v in kind for v in ("v2", "v3", "v4", "v5")) else 256


def _vmem_limit(bytes_needed):
    """Generation-aware scoped-VMEM limit (v7x only has 64 MiB physical/core)."""
    try:
        cap = int(pltpu.get_tpu_info().vmem_capacity_bytes)
    except Exception:
        cap = 64 * 2 ** 20           # conservative (v7x per-core VMEM)
    return int(min(int(0.8 * cap), max(32 * 2 ** 20, 2 * bytes_needed)))


def _choose_tiling(T, V, lane_target):
    """Pick (t_tile, V_pad): lane width t_tile*V_pad is a multiple of 128 and
    close to (preferably not above) one MXU pass, with T % t_tile == 0.
    V is zero-padded when needed (e.g. V=25/18 skeletons)."""
    def pick_t(vp):
        cands = [t for t in range(1, T + 1)
                 if T % t == 0 and (t * vp) % 128 == 0 and t * vp <= 2 * lane_target]
        if not cands:
            return None
        small = [t for t in cands if t * vp <= lane_target]
        return max(small) if small else min(cands)

    pads = [V] + [vp for vp in range((V + 7) // 8 * 8, V + 129, 8) if vp != V]
    for vp in pads:
        t = pick_t(vp)
        if t is not None:
            return t, vp
    return T, V     # full-length fallback (tiny T*V only; always a legal block)


def conv_temporal_graphical(x, A, weight, bias, kernel_size, *, t_tile=None,
                            mxu_dtype=None, aggregate_first=None):
    """x: (N, C_in, T, V), A: (N, K, V, V), weight: (K*C_out, C_in, 1, 1),
    bias: (K*C_out,) or None. Returns (out (N, C_out, T, V), A)."""
    N, C_in, T, V = x.shape
    K = kernel_size
    KC, C_in_w, tks, one = weight.shape
    assert (tks, one) == (1, 1) and C_in_w == C_in and KC % K == 0
    assert A.shape == (N, K, V, V)
    C_out = KC // K

    if mxu_dtype is None:
        # bf16 MXU operands by default on fp32 inputs (v6e/v7x peak is bf16);
        # accumulation + bias stay fp32 in-kernel, so this is v5e-safe too.
        mxu_dtype = jnp.bfloat16 if x.dtype == jnp.float32 else x.dtype
    mxu_dtype = jnp.dtype(mxu_dtype)
    if aggregate_first is None:
        aggregate_first = C_in <= C_out   # aggregation flops scale with this count
    if bias is None:
        bias = jnp.zeros((KC,), jnp.float32)

    # ---- tiling -------------------------------------------------------------
    if t_tile is None:
        t_tile, V_pad = _choose_tiling(T, V, _lane_target())
    else:
        V_pad = V
        assert T % t_tile == 0 and ((t_tile * V) % 128 == 0 or t_tile == T), \
            "explicit t_tile must give a 128-multiple (or full-length) lane width"
    TtV = t_tile * V_pad
    n_t_tiles = T // t_tile

    # ---- layout glue (free reshapes / tiny tensors; no HBM transpose of x) --
    if V_pad != V:
        x = jnp.pad(x, ((0, 0), (0, 0), (0, 0), (0, V_pad - V)))
        A_p = jnp.pad(A, ((0, 0), (0, 0), (0, V_pad - V), (0, V_pad - V)))
    else:
        A_p = A
    x3 = x.reshape(N, C_in, T * V_pad)                      # native dtype; cast in-kernel
    w3 = weight.reshape(K, C_out, C_in).astype(mxu_dtype)   # tiny, reused every block
    # Post-aggregation bias: out_bias[n, c, w] = sum_k b[k, c] * sum_v A[n, k, v, w].
    bias_agg = jnp.einsum("nkvw,kc->ncw",
                          A_p.astype(jnp.float32),
                          bias.reshape(K, C_out).astype(jnp.float32))   # (N, C_out, V_pad)

    # ---- VMEM budget / cost hint --------------------------------------------
    itemsize = mxu_dtype.itemsize
    scratch_bytes = K * TtV * TtV * itemsize + C_out * TtV * 4
    block_bytes = (x3.dtype.itemsize * C_in * TtV          # x tile
                   + x3.dtype.itemsize * C_out * TtV       # out tile
                   + itemsize * K * C_out * C_in           # weights
                   + A_p.dtype.itemsize * K * V_pad * V_pad
                   + 4 * C_out * V_pad)
    vmem_limit = _vmem_limit(scratch_bytes + 2 * block_bytes + (4 << 20))

    c_agg = C_in if aggregate_first else C_out
    flops = N * n_t_tiles * (2 * K * c_agg * TtV * TtV + 2 * K * C_out * C_in * TtV)
    bytes_accessed = (x3.size * x3.dtype.itemsize
                      + N * C_out * T * V_pad * x3.dtype.itemsize
                      + A_p.size * A_p.dtype.itemsize
                      + bias_agg.size * 4
                      + w3.size * itemsize)
    cost = pl.CostEstimate(flops=int(flops), transcendentals=0,
                           bytes_accessed=int(bytes_accessed))

    kern = functools.partial(_ctg_kernel, K=K, C_out=C_out, V=V_pad,
                             t_tile=t_tile, mxu_dtype=mxu_dtype,
                             aggregate_first=aggregate_first)
    out2 = pl.pallas_call(
        kern,
        out_shape=jax.ShapeDtypeStruct((N, C_out, T * V_pad), x.dtype),
        grid_spec=pltpu.PrefetchScalarGridSpec(
            num_scalar_prefetch=0,
            grid=(N, n_t_tiles),                    # tt innermost: per-n operands stay put
            in_specs=[
                pl.BlockSpec((1, C_in, TtV), lambda n, tt: (n, 0, tt)),
                pl.BlockSpec((K, C_out, C_in), lambda n, tt: (0, 0, 0)),
                pl.BlockSpec((1, K, V_pad, V_pad), lambda n, tt: (n, 0, 0, 0)),
                pl.BlockSpec((1, C_out, V_pad), lambda n, tt: (n, 0, 0)),
            ],
            out_specs=pl.BlockSpec((1, C_out, TtV), lambda n, tt: (n, 0, tt)),
            scratch_shapes=[
                pltpu.VMEM((K, TtV, TtV), mxu_dtype),   # block-diag adjacency (per n)
                pltpu.VMEM((C_out, TtV), jnp.float32),  # post-aggregation bias tile
            ]),
        compiler_params=pltpu.CompilerParams(
            # N parallel (megacore splits samples, keeping the once-per-n
            # adjacency fetch/scratch build per core); tt must stay sequential
            # because tiles tt > 0 reuse the scratch built at tt == 0.
            dimension_semantics=("parallel", "arbitrary"),
            vmem_limit_bytes=vmem_limit),
        cost_estimate=cost,
    )(x3, w3, A_p, bias_agg)

    out = out2.reshape(N, C_out, T, V_pad)          # free reshape -> PyTorch NCHW
    if V_pad != V:
        out = out[..., :V]
    return out, A


def _reference(x, A, weight, bias, K):
    """Pure-JAX reference matching the PyTorch forward."""
    N, C_in, T, V = x.shape
    C_out = weight.shape[0] // K
    w2 = weight.reshape(K * C_out, C_in)
    z = jnp.einsum("oc,nctv->notv", w2, x) + bias[None, :, None, None]
    z = z.reshape(N, K, C_out, T, V)
    return jnp.einsum("nkctv,nkvw->nctw", z, A)


if __name__ == "__main__":
    # Small shapes consistent with the module.
    N, C_in, C_out, T, V, K = 2, 4, 8, 16, 16, 3

    key = jax.random.PRNGKey(0)
    kx, ka, kw, kb = jax.random.split(key, 4)
    x = jax.random.normal(kx, (N, C_in, T, V), dtype=jnp.float32)
    A = jax.random.normal(ka, (N, K, V, V), dtype=jnp.float32)
    weight = 0.1 * jax.random.normal(kw, (K * C_out, C_in, 1, 1), dtype=jnp.float32)
    bias = 0.1 * jax.random.normal(kb, (K * C_out,), dtype=jnp.float32)

    ref = _reference(x, A, weight, bias, K)

    # 1) fp32 MXU operands (strict check), auto tiling.
    out, A_out = conv_temporal_graphical(x, A, weight, bias, K, mxu_dtype=jnp.float32)
    out = jax.block_until_ready(out)
    assert out.shape == (N, C_out, T, V) and A_out.shape == A.shape
    assert jnp.allclose(out, ref, atol=1e-3, rtol=1e-3), "mismatch (fp32)"

    # 2) Default path: bf16 MXU operands, fp32 accumulation (v6e/v7x fast path).
    out_bf, _ = conv_temporal_graphical(x, A, weight, bias, K)
    out_bf = jax.block_until_ready(out_bf)
    assert jnp.allclose(out_bf, ref, atol=5e-2, rtol=5e-2), "mismatch (bf16 default)"

    # 3) Multi-tile T axis (exercises the once-per-sample scratch build at tt == 0).
    out_t, _ = conv_temporal_graphical(x, A, weight, bias, K, t_tile=8,
                                       mxu_dtype=jnp.float32)
    out_t = jax.block_until_ready(out_t)
    assert jnp.allclose(out_t, ref, atol=1e-3, rtol=1e-3), "mismatch (tiled)"

    # 4) Convolve-then-aggregate order (used when C_out < C_in).
    out_cf, _ = conv_temporal_graphical(x, A, weight, bias, K, t_tile=8,
                                        mxu_dtype=jnp.float32, aggregate_first=False)
    out_cf = jax.block_until_ready(out_cf)
    assert jnp.allclose(out_cf, ref, atol=1e-3, rtol=1e-3), "mismatch (conv-first)"

    # 5) Non-power-of-two joint count (V=25, real skeleton) -> lane padding path.
    V2 = 25
    x2 = jax.random.normal(kx, (N, C_in, T, V2), dtype=jnp.float32)
    A2 = jax.random.normal(ka, (N, K, V2, V2), dtype=jnp.float32)
    ref2 = _reference(x2, A2, weight, bias, K)
    out_p, _ = conv_temporal_graphical(x2, A2, weight, bias, K, mxu_dtype=jnp.float32)
    out_p = jax.block_until_ready(out_p)
    assert out_p.shape == (N, C_out, T, V2)
    assert jnp.allclose(out_p, ref2, atol=1e-3, rtol=1e-3), "mismatch (padded V)"

    print("KERNEL_OK")
</pallas_src>

<mosaic_0001>
module attributes {stable_mosaic.version = 11 : i64} {
  func.func @_ctg_kernel(%arg0: i32, %arg1: i32, %arg2: memref<1x4x256xf32, #tpu.memory_space<vmem>>, %arg3: memref<3x8x4xf32, #tpu.memory_space<vmem>>, %arg4: memref<1x3x16x16xf32, #tpu.memory_space<vmem>>, %arg5: memref<1x8x16xf32, #tpu.memory_space<vmem>>, %arg6: memref<1x8x256xf32, #tpu.memory_space<vmem>>, %arg7: memref<3x256x256xf32, #tpu.memory_space<vmem>>, %arg8: memref<8x256xf32, #tpu.memory_space<vmem>>) attributes {dimension_semantics = [#tpu.dimension_semantics<parallel>, #tpu.dimension_semantics<arbitrary>], iteration_bounds = array<i64: 2, 1>, scalar_prefetch = 0 : i64, scratch_operands = 2 : i64, tpu.core_type = #tpu.core_type<tc>, window_params = [{transform_indices = @transform_0, window_bounds = array<i64: 1, 4, 256>}, {pipeline_mode = #tpu.pipeline_mode<synchronous>, transform_indices = @transform_1, window_bounds = array<i64: 3, 8, 4>}, {transform_indices = @transform_2, window_bounds = array<i64: 1, 3, 16, 16>}, {transform_indices = @transform_3, window_bounds = array<i64: 1, 8, 16>}, {transform_indices = @transform_4, window_bounds = array<i64: 1, 8, 256>}]} {
    %c0_i32 = arith.constant 0 : i32
    %0 = arith.cmpi eq, %arg1, %c0_i32 : i32
    %1 = arith.extui %0 : i1 to i32
    %c0_i32_0 = arith.constant 0 : i32
    %2 = arith.cmpi ne, %1, %c0_i32_0 : i32
    scf.if %2 {
      %c0_29 = arith.constant 0 : index
      %c0_30 = arith.constant 0 : index
      %c0_31 = arith.constant 0 : index
      %c0_32 = arith.constant 0 : index
      %30 = vector.load %arg4[%c0_29, %c0_30, %c0_31, %c0_32] : memref<1x3x16x16xf32, #tpu.memory_space<vmem>>, vector<1x3x16x16xf32>
      %31 = vector.shape_cast %30 : vector<1x3x16x16xf32> to vector<3x16x16xf32>
      %c0_33 = arith.constant 0 : index
      %c0_34 = arith.constant 0 : index
      %c0_35 = arith.constant 0 : index
      %32 = vector.load %arg5[%c0_33, %c0_34, %c0_35] : memref<1x8x16xf32, #tpu.memory_space<vmem>>, vector<1x8x16xf32>
      %33 = vector.shape_cast %32 : vector<1x8x16xf32> to vector<8x16xf32>
      %cst_36 = arith.constant 0.000000e+00 : f32
      %34 = vector.broadcast %cst_36 : f32 to vector<3x256x256xf32>
      %c0_37 = arith.constant 0 : index
      %c0_38 = arith.constant 0 : index
      %c0_39 = arith.constant 0 : index
      %35 = vector.load %arg7[%c0_37, %c0_38, %c0_39] : memref<3x256x256xf32, #tpu.memory_space<vmem>>, vector<3x256x256xf32>
      tpu.vector_store %arg7[%c0_37, %c0_38, %c0_39], %34 {strides = array<i32>} : memref<3x256x256xf32, #tpu.memory_space<vmem>>, vector<3x256x256xf32>,
      %c0_40 = arith.constant 0 : index
      %c0_41 = arith.constant 0 : index
      %36 = vector.load %arg8[%c0_40, %c0_41] : memref<8x256xf32, #tpu.memory_space<vmem>>, vector<8x16xf32>
      tpu.vector_store %arg8[%c0_40, %c0_41], %33 {strides = array<i32>} : memref<8x256xf32, #tpu.memory_space<vmem>>, vector<8x16xf32>,
      %37 = vector.extract_strided_slice %31 {offsets = [0, 0, 0], sizes = [1, 16, 16], strides = [1, 1, 1]} : vector<3x16x16xf32> to vector<1x16x16xf32>
      %38 = vector.shape_cast %37 : vector<1x16x16xf32> to vector<16x16xf32>
      %c0_42 = arith.constant 0 : index
      %c0_43 = arith.constant 0 : index
      %c0_44 = arith.constant 0 : index
      %39 = vector.load %arg7[%c0_42, %c0_43, %c0_44] : memref<3x256x256xf32, #tpu.memory_space<vmem>>, vector<1x16x16xf32>
      %40 = vector.shape_cast %39 : vector<1x16x16xf32> to vector<16x16xf32>
      %41 = vector.shape_cast %38 : vector<16x16xf32> to vector<1x16x16xf32>
      tpu.vector_store %arg7[%c0_42, %c0_43, %c0_44], %41 {strides = array<i32>} : memref<3x256x256xf32, #tpu.memory_space<vmem>>, vector<1x16x16xf32>,
      %42 = vector.extract_strided_slice %31 {offsets = [1, 0, 0], sizes = [1, 16, 16], strides = [1, 1, 1]} : vector<3x16x16xf32> to vector<1x16x16xf32>
      %43 = vector.shape_cast %42 : vector<1x16x16xf32> to vector<16x16xf32>
      %c1_45 = arith.constant 1 : index
      %c0_46 = arith.constant 0 : index
      %c0_47 = arith.constant 0 : index
      %44 = vector.load %arg7[%c1_45, %c0_46, %c0_47] : memref<3x256x256xf32, #tpu.memory_space<vmem>>, vector<1x16x16xf32>
      %45 = vector.shape_cast %44 : vector<1x16x16xf32> to vector<16x16xf32>
      %46 = vector.shape_cast %43 : vector<16x16xf32> to vector<1x16x16xf32>
      tpu.vector_store %arg7[%c1_45, %c0_46, %c0_47], %46 {strides = array<i32>} : memref<3x256x256xf32, #tpu.memory_space<vmem>>, vector<1x16x16xf32>,
      %47 = vector.extract_strided_slice %31 {offsets = [2, 0, 0], sizes = [1, 16, 16], strides = [1, 1, 1]} : vector<3x16x16xf32> to vector<1x16x16xf32>
      %48 = vector.shape_cast %47 : vector<1x16x16xf32> to vector<16x16xf32>
      %c2_48 = arith.constant 2 : index
      %c0_49 = arith.constant 0 : index
      %c0_50 = arith.constant 0 : index
      %49 = vector.load %arg7[%c2_48, %c0_49, %c0_50] : memref<3x256x256xf32, #tpu.memory_space<vmem>>, vector<1x16x16xf32>
      %50 = vector.shape_cast %49 : vector<1x16x16xf32> to vector<16x16xf32>
      %51 = vector.shape_cast %48 : vector<16x16xf32> to vector<1x16x16xf32>
      tpu.vector_store %arg7[%c2_48, %c0_49, %c0_50], %51 {strides = array<i32>} : memref<3x256x256xf32, #tpu.memory_space<vmem>>, vector<1x16x16xf32>,
      %c0_51 = arith.constant 0 : index
      %c16 = arith.constant 16 : index
      %52 = vector.load %arg8[%c0_51, %c16] : memref<8x256xf32, #tpu.memory_space<vmem>>, vector<8x16xf32>
      tpu.vector_store %arg8[%c0_51, %c16], %33 {strides = array<i32>} : memref<8x256xf32, #tpu.memory_space<vmem>>, vector<8x16xf32>,
      %53 = vector.extract_strided_slice %31 {offsets = [0, 0, 0], sizes = [1, 16, 16], strides = [1, 1, 1]} : vector<3x16x16xf32> to vector<1x16x16xf32>
      %54 = vector.shape_cast %53 : vector<1x16x16xf32> to vector<16x16xf32>
      %c0_52 = arith.constant 0 : index
      %c16_53 = arith.constant 16 : index
      %c16_54 = arith.constant 16 : index
      %55 = vector.load %arg7[%c0_52, %c16_53, %c16_54] : memref<3x256x256xf32, #tpu.memory_space<vmem>>, vector<1x16x16xf32>
      %56 = vector.shape_cast %55 : vector<1x16x16xf32> to vector<16x16xf32>
      %57 = vector.shape_cast %54 : vector<16x16xf32> to vector<1x16x16xf32>
      tpu.vector_store %arg7[%c0_52, %c16_53, %c16_54], %57 {strides = array<i32>} : memref<3x256x256xf32, #tpu.memory_space<vmem>>, vector<1x16x16xf32>,
      %58 = vector.extract_strided_slice %31 {offsets = [1, 0, 0], sizes = [1, 16, 16], strides = [1, 1, 1]} : vector<3x16x16xf32> to vector<1x16x16xf32>
      %59 = vector.shape_cast %58 : vector<1x16x16xf32> to vector<16x16xf32>
      %c1_55 = arith.constant 1 : index
      %c16_56 = arith.constant 16 : index
      %c16_57 = arith.constant 16 : index
      %60 = vector.load %arg7[%c1_55, %c16_56, %c16_57] : memref<3x256x256xf32, #tpu.memory_space<vmem>>, vector<1x16x16xf32>
      %61 = vector.shape_cast %60 : vector<1x16x16xf32> to vector<16x16xf32>
      %62 = vector.shape_cast %59 : vector<16x16xf32> to vector<1x16x16xf32>
      tpu.vector_store %arg7[%c1_55, %c16_56, %c16_57], %62 {strides = array<i32>} : memref<3x256x256xf32, #tpu.memory_space<vmem>>, vector<1x16x16xf32>,
      %63 = vector.extract_strided_slice %31 {offsets = [2, 0, 0], sizes = [1, 16, 16], strides = [1, 1, 1]} : vector<3x16x16xf32> to vector<1x16x16xf32>
      %64 = vector.shape_cast %63 : vector<1x16x16xf32> to vector<16x16xf32>
      %c2_58 = arith.constant 2 : index
      %c16_59 = arith.constant 16 : index
      %c16_60 = arith.constant 16 : index
      %65 = vector.load %arg7[%c2_58, %c16_59, %c16_60] : memref<3x256x256xf32, #tpu.memory_space<vmem>>, vector<1x16x16xf32>
      %66 = vector.shape_cast %65 : vector<1x16x16xf32> to vector<16x16xf32>
      %67 = vector.shape_cast %64 : vector<16x16xf32> to vector<1x16x16xf32>
      tpu.vector_store %arg7[%c2_58, %c16_59, %c16_60], %67 {strides = array<i32>} : memref<3x256x256xf32, #tpu.memory_space<vmem>>, vector<1x16x16xf32>,
      %c0_61 = arith.constant 0 : index
      %c32 = arith.constant 32 : index
      %68 = vector.load %arg8[%c0_61, %c32] : memref<8x256xf32, #tpu.memory_space<vmem>>, vector<8x16xf32>
      tpu.vector_store %arg8[%c0_61, %c32], %33 {strides = array<i32>} : memref<8x256xf32, #tpu.memory_space<vmem>>, vector<8x16xf32>,
      %69 = vector.extract_strided_slice %31 {offsets = [0, 0, 0], sizes = [1, 16, 16], strides = [1, 1, 1]} : vector<3x16x16xf32> to vector<1x16x16xf32>
      %70 = vector.shape_cast %69 : vector<1x16x16xf32> to vector<16x16xf32>
      %c0_62 = arith.constant 0 : index
      %c32_63 = arith.constant 32 : index
      %c32_64 = arith.constant 32 : index
      %71 = vector.load %arg7[%c0_62, %c32_63, %c32_64] : memref<3x256x256xf32, #tpu.memory_space<vmem>>, vector<1x16x16xf32>
      %72 = vector.shape_cast %71 : vector<1x16x16xf32> to vector<16x16xf32>
      %73 = vector.shape_cast %70 : vector<16x16xf32> to vector<1x16x16xf32>
      tpu.vector_store %arg7[%c0_62, %c32_63, %c32_64], %73 {strides = array<i32>} : memref<3x256x256xf32, #tpu.memory_space<vmem>>, vector<1x16x16xf32>,
      %74 = vector.extract_strided_slice %31 {offsets = [1, 0, 0], sizes = [1, 16, 16], strides = [1, 1, 1]} : vector<3x16x16xf32> to vector<1x16x16xf32>
      %75 = vector.shape_cast %74 : vector<1x16x16xf32> to vector<16x16xf32>
      %c1_65 = arith.constant 1 : index
      %c32_66 = arith.constant 32 : index
      %c32_67 = arith.constant 32 : index
      %76 = vector.load %arg7[%c1_65, %c32_66, %c32_67] : memref<3x256x256xf32, #tpu.memory_space<vmem>>, vector<1x16x16xf32>
      %77 = vector.shape_cast %76 : vector<1x16x16xf32> to vector<16x16xf32>
      %78 = vector.shape_cast %75 : vector<16x16xf32> to vector<1x16x16xf32>
      tpu.vector_store %arg7[%c1_65, %c32_66, %c32_67], %78 {strides = array<i32>} : memref<3x256x256xf32, #tpu.memory_space<vmem>>, vector<1x16x16xf32>,
      %79 = vector.extract_strided_slice %31 {offsets = [2, 0, 0], sizes = [1, 16, 16], strides = [1, 1, 1]} : vector<3x16x16xf32> to vector<1x16x16xf32>
      %80 = vector.shape_cast %79 : vector<1x16x16xf32> to vector<16x16xf32>
      %c2_68 = arith.constant 2 : index
      %c32_69 = arith.constant 32 : index
      %c32_70 = arith.constant 32 : index
      %81 = vector.load %arg7[%c2_68, %c32_69, %c32_70] : memref<3x256x256xf32, #tpu.memory_space<vmem>>, vector<1x16x16xf32>
      %82 = vector.shape_cast %81 : vector<1x16x16xf32> to vector<16x16xf32>
      %83 = vector.shape_cast %80 : vector<16x16xf32> to vector<1x16x16xf32>
      tpu.vector_store %arg7[%c2_68, %c32_69, %c32_70], %83 {strides = array<i32>} : memref<3x256x256xf32, #tpu.memory_space<vmem>>, vector<1x16x16xf32>,
      %c0_71 = arith.constant 0 : index
      %c48 = arith.constant 48 : index
      %84 = vector.load %arg8[%c0_71, %c48] : memref<8x256xf32, #tpu.memory_space<vmem>>, vector<8x16xf32>
      tpu.vector_store %arg8[%c0_71, %c48], %33 {strides = array<i32>} : memref<8x256xf32, #tpu.memory_space<vmem>>, vector<8x16xf32>,
      %85 = vector.extract_strided_slice %31 {offsets = [0, 0, 0], sizes = [1, 16, 16], strides = [1, 1, 1]} : vector<3x16x16xf32> to vector<1x16x16xf32>
      %86 = vector.shape_cast %85 : vector<1x16x16xf32> to vector<16x16xf32>
      %c0_72 = arith.constant 0 : index
      %c48_73 = arith.constant 48 : index
      %c48_74 = arith.constant 48 : index
      %87 = vector.load %arg7[%c0_72, %c48_73, %c48_74] : memref<3x256x256xf32, #tpu.memory_space<vmem>>, vector<1x16x16xf32>
      %88 = vector.shape_cast %87 : vector<1x16x16xf32> to vector<16x16xf32>
      %89 = vector.shape_cast %86 : vector<16x16xf32> to vector<1x16x16xf32>
      tpu.vector_store %arg7[%c0_72, %c48_73, %c48_74], %89 {strides = array<i32>} : memref<3x256x256xf32, #tpu.memory_space<vmem>>, vector<1x16x16xf32>,
      %90 = vector.extract_strided_slice %31 {offsets = [1, 0, 0], sizes = [1, 16, 16], strides = [1, 1, 1]} : vector<3x16x16xf32> to vector<1x16x16xf32>
      %91 = vector.shape_cast %90 : vector<1x16x16xf32> to vector<16x16xf32>
      %c1_75 = arith.constant 1 : index
      %c48_76 = arith.constant 48 : index
      %c48_77 = arith.constant 48 : index
      %92 = vector.load %arg7[%c1_75, %c48_76, %c48_77] : memref<3x256x256xf32, #tpu.memory_space<vmem>>, vector<1x16x16xf32>
      %93 = vector.shape_cast %92 : vector<1x16x16xf32> to vector<16x16xf32>
      %94 = vector.shape_cast %91 : vector<16x16xf32> to vector<1x16x16xf32>
      tpu.vector_store %arg7[%c1_75, %c48_76, %c48_77], %94 {strides = array<i32>} : memref<3x256x256xf32, #tpu.memory_space<vmem>>, vector<1x16x16xf32>,
      %95 = vector.extract_strided_slice %31 {offsets = [2, 0, 0], sizes = [1, 16, 16], strides = [1, 1, 1]} : vector<3x16x16xf32> to vector<1x16x16xf32>
      %96 = vector.shape_cast %95 : vector<1x16x16xf32> to vector<16x16xf32>
      %c2_78 = arith.constant 2 : index
      %c48_79 = arith.constant 48 : index
      %c48_80 = arith.constant 48 : index
      %97 = vector.load %arg7[%c2_78, %c48_79, %c48_80] : memref<3x256x256xf32, #tpu.memory_space<vmem>>, vector<1x16x16xf32>
      %98 = vector.shape_cast %97 : vector<1x16x16xf32> to vector<16x16xf32>
      %99 = vector.shape_cast %96 : vector<16x16xf32> to vector<1x16x16xf32>
      tpu.vector_store %arg7[%c2_78, %c48_79, %c48_80], %99 {strides = array<i32>} : memref<3x256x256xf32, #tpu.memory_space<vmem>>, vector<1x16x16xf32>,
      %c0_81 = arith.constant 0 : index
      %c64 = arith.constant 64 : index
      %100 = vector.load %arg8[%c0_81, %c64] : memref<8x256xf32, #tpu.memory_space<vmem>>, vector<8x16xf32>
      tpu.vector_store %arg8[%c0_81, %c64], %33 {strides = array<i32>} : memref<8x256xf32, #tpu.memory_space<vmem>>, vector<8x16xf32>,
      %101 = vector.extract_strided_slice %31 {offsets = [0, 0, 0], sizes = [1, 16, 16], strides = [1, 1, 1]} : vector<3x16x16xf32> to vector<1x16x16xf32>
      %102 = vector.shape_cast %101 : vector<1x16x16xf32> to vector<16x16xf32>
      %c0_82 = arith.constant 0 : index
      %c64_83 = arith.constant 64 : index
      %c64_84 = arith.constant 64 : index
      %103 = vector.load %arg7[%c0_82, %c64_83, %c64_84] : memref<3x256x256xf32, #tpu.memory_space<vmem>>, vector<1x16x16xf32>
      %104 = vector.shape_cast %103 : vector<1x16x16xf32> to vector<16x16xf32>
      %105 = vector.shape_cast %102 : vector<16x16xf32> to vector<1x16x16xf32>
      tpu.vector_store %arg7[%c0_82, %c64_83, %c64_84], %105 {strides = array<i32>} : memref<3x256x256xf32, #tpu.memory_space<vmem>>, vector<1x16x16xf32>,
      %106 = vector.extract_strided_slice %31 {offsets = [1, 0, 0], sizes = [1, 16, 16], strides = [1, 1, 1]} : vector<3x16x16xf32> to vector<1x16x16xf32>
      %107 = vector.shape_cast %106 : vector<1x16x16xf32> to vector<16x16xf32>
      %c1_85 = arith.constant 1 : index
      %c64_86 = arith.constant 64 : index
      %c64_87 = arith.constant 64 : index
      %108 = vector.load %arg7[%c1_85, %c64_86, %c64_87] : memref<3x256x256xf32, #tpu.memory_space<vmem>>, vector<1x16x16xf32>
      %109 = vector.shape_cast %108 : vector<1x16x16xf32> to vector<16x16xf32>
      %110 = vector.shape_cast %107 : vector<16x16xf32> to vector<1x16x16xf32>
      tpu.vector_store %arg7[%c1_85, %c64_86, %c64_87], %110 {strides = array<i32>} : memref<3x256x256xf32, #tpu.memory_space<vmem>>, vector<1x16x16xf32>,
      %111 = vector.extract_strided_slice %31 {offsets = [2, 0, 0], sizes = [1, 16, 16], strides = [1, 1, 1]} : vector<3x16x16xf32> to vector<1x16x16xf32>
      %112 = vector.shape_cast %111 : vector<1x16x16xf32> to vector<16x16xf32>
      %c2_88 = arith.constant 2 : index
      %c64_89 = arith.constant 64 : index
      %c64_90 = arith.constant 64 : index
      %113 = vector.load %arg7[%c2_88, %c64_89, %c64_90] : memref<3x256x256xf32, #tpu.memory_space<vmem>>, vector<1x16x16xf32>
      %114 = vector.shape_cast %113 : vector<1x16x16xf32> to vector<16x16xf32>
      %115 = vector.shape_cast %112 : vector<16x16xf32> to vector<1x16x16xf32>
      tpu.vector_store %arg7[%c2_88, %c64_89, %c64_90], %115 {strides = array<i32>} : memref<3x256x256xf32, #tpu.memory_space<vmem>>, vector<1x16x16xf32>,
      %c0_91 = arith.constant 0 : index
      %c80 = arith.constant 80 : index
      %116 = vector.load %arg8[%c0_91, %c80] : memref<8x256xf32, #tpu.memory_space<vmem>>, vector<8x16xf32>
      tpu.vector_store %arg8[%c0_91, %c80], %33 {strides = array<i32>} : memref<8x256xf32, #tpu.memory_space<vmem>>, vector<8x16xf32>,
      %117 = vector.extract_strided_slice %31 {offsets = [0, 0, 0], sizes = [1, 16, 16], strides = [1, 1, 1]} : vector<3x16x16xf32> to vector<1x16x16xf32>
      %118 = vector.shape_cast %117 : vector<1x16x16xf32> to vector<16x16xf32>
      %c0_92 = arith.constant 0 : index
      %c80_93 = arith.constant 80 : index
      %c80_94 = arith.constant 80 : index
      %119 = vector.load %arg7[%c0_92, %c80_93, %c80_94] : memref<3x256x256xf32, #tpu.memory_space<vmem>>, vector<1x16x16xf32>
      %120 = vector.shape_cast %119 : vector<1x16x16xf32> to vector<16x16xf32>
      %121 = vector.shape_cast %118 : vector<16x16xf32> to vector<1x16x16xf32>
      tpu.vector_store %arg7[%c0_92, %c80_93, %c80_94], %121 {strides = array<i32>} : memref<3x256x256xf32, #tpu.memory_space<vmem>>, vector<1x16x16xf32>,
      %122 = vector.extract_strided_slice %31 {offsets = [1, 0, 0], sizes = [1, 16, 16], strides = [1, 1, 1]} : vector<3x16x16xf32> to vector<1x16x16xf32>
      %123 = vector.shape_cast %122 : vector<1x16x16xf32> to vector<16x16xf32>
      %c1_95 = arith.constant 1 : index
      %c80_96 = arith.constant 80 : index
      %c80_97 = arith.constant 80 : index
      %124 = vector.load %arg7[%c1_95, %c80_96, %c80_97] : memref<3x256x256xf32, #tpu.memory_space<vmem>>, vector<1x16x16xf32>
      %125 = vector.shape_cast %124 : vector<1x16x16xf32> to vector<16x16xf32>
      %126 = vector.shape_cast %123 : vector<16x16xf32> to vector<1x16x16xf32>
      tpu.vector_store %arg7[%c1_95, %c80_96, %c80_97], %126 {strides = array<i32>} : memref<3x256x256xf32, #tpu.memory_space<vmem>>, vector<1x16x16xf32>,
      %127 = vector.extract_strided_slice %31 {offsets = [2, 0, 0], sizes = [1, 16, 16], strides = [1, 1, 1]} : vector<3x16x16xf32> to vector<1x16x16xf32>
      %128 = vector.shape_cast %127 : vector<1x16x16xf32> to vector<16x16xf32>
      %c2_98 = arith.constant 2 : index
      %c80_99 = arith.constant 80 : index
      %c80_100 = arith.constant 80 : index
      %129 = vector.load %arg7[%c2_98, %c80_99, %c80_100] : memref<3x256x256xf32, #tpu.memory_space<vmem>>, vector<1x16x16xf32>
      %130 = vector.shape_cast %129 : vector<1x16x16xf32> to vector<16x16xf32>
      %131 = vector.shape_cast %128 : vector<16x16xf32> to vector<1x16x16xf32>
      tpu.vector_store %arg7[%c2_98, %c80_99, %c80_100], %131 {strides = array<i32>} : memref<3x256x256xf32, #tpu.memory_space<vmem>>, vector<1x16x16xf32>,
      %c0_101 = arith.constant 0 : index
      %c96 = arith.constant 96 : index
      %132 = vector.load %arg8[%c0_101, %c96] : memref<8x256xf32, #tpu.memory_space<vmem>>, vector<8x16xf32>
      tpu.vector_store %arg8[%c0_101, %c96], %33 {strides = array<i32>} : memref<8x256xf32, #tpu.memory_space<vmem>>, vector<8x16xf32>,
      %133 = vector.extract_strided_slice %31 {offsets = [0, 0, 0], sizes = [1, 16, 16], strides = [1, 1, 1]} : vector<3x16x16xf32> to vector<1x16x16xf32>
      %134 = vector.shape_cast %133 : vector<1x16x16xf32> to vector<16x16xf32>
      %c0_102 = arith.constant 0 : index
      %c96_103 = arith.constant 96 : index
      %c96_104 = arith.constant 96 : index
      %135 = vector.load %arg7[%c0_102, %c96_103, %c96_104] : memref<3x256x256xf32, #tpu.memory_space<vmem>>, vector<1x16x16xf32>
      %136 = vector.shape_cast %135 : vector<1x16x16xf32> to vector<16x16xf32>
      %137 = vector.shape_cast %134 : vector<16x16xf32> to vector<1x16x16xf32>
      tpu.vector_store %arg7[%c0_102, %c96_103, %c96_104], %137 {strides = array<i32>} : memref<3x256x256xf32, #tpu.memory_space<vmem>>, vector<1x16x16xf32>,
      %138 = vector.extract_strided_slice %31 {offsets = [1, 0, 0], sizes = [1, 16, 16], strides = [1, 1, 1]} : vector<3x16x16xf32> to vector<1x16x16xf32>
      %139 = vector.shape_cast %138 : vector<1x16x16xf32> to vector<16x16xf32>
      %c1_105 = arith.constant 1 : index
      %c96_106 = arith.constant 96 : index
      %c96_107 = arith.constant 96 : index
      %140 = vector.load %arg7[%c1_105, %c96_106, %c96_107] : memref<3x256x256xf32, #tpu.memory_space<vmem>>, vector<1x16x16xf32>
      %141 = vector.shape_cast %140 : vector<1x16x16xf32> to vector<16x16xf32>
      %142 = vector.shape_cast %139 : vector<16x16xf32> to vector<1x16x16xf32>
      tpu.vector_store %arg7[%c1_105, %c96_106, %c96_107], %142 {strides = array<i32>} : memref<3x256x256xf32, #tpu.memory_space<vmem>>, vector<1x16x16xf32>,
      %143 = vector.extract_strided_slice %31 {offsets = [2, 0, 0], sizes = [1, 16, 16], strides = [1, 1, 1]} : vector<3x16x16xf32> to vector<1x16x16xf32>
      %144 = vector.shape_cast %143 : vector<1x16x16xf32> to vector<16x16xf32>
      %c2_108 = arith.constant 2 : index
      %c96_109 = arith.constant 96 : index
      %c96_110 = arith.constant 96 : index
      %145 = vector.load %arg7[%c2_108, %c96_109, %c96_110] : memref<3x256x256xf32, #tpu.memory_space<vmem>>, vector<1x16x16xf32>
      %146 = vector.shape_cast %145 : vector<1x16x16xf32> to vector<16x16xf32>
      %147 = vector.shape_cast %144 : vector<16x16xf32> to vector<1x16x16xf32>
      tpu.vector_store %arg7[%c2_108, %c96_109, %c96_110], %147 {strides = array<i32>} : memref<3x256x256xf32, #tpu.memory_space<vmem>>, vector<1x16x16xf32>,
      %c0_111 = arith.constant 0 : index
      %c112 = arith.constant 112 : index
      %148 = vector.load %arg8[%c0_111, %c112] : memref<8x256xf32, #tpu.memory_space<vmem>>, vector<8x16xf32>
      tpu.vector_store %arg8[%c0_111, %c112], %33 {strides = array<i32>} : memref<8x256xf32, #tpu.memory_space<vmem>>, vector<8x16xf32>,
      %149 = vector.extract_strided_slice %31 {offsets = [0, 0, 0], sizes = [1, 16, 16], strides = [1, 1, 1]} : vector<3x16x16xf32> to vector<1x16x16xf32>
      %150 = vector.shape_cast %149 : vector<1x16x16xf32> to vector<16x16xf32>
      %c0_112 = arith.constant 0 : index
      %c112_113 = arith.constant 112 : index
      %c112_114 = arith.constant 112 : index
      %151 = vector.load %arg7[%c0_112, %c112_113, %c112_114] : memref<3x256x256xf32, #tpu.memory_space<vmem>>, vector<1x16x16xf32>
      %152 = vector.shape_cast %151 : vector<1x16x16xf32> to vector<16x16xf32>
      %153 = vector.shape_cast %150 : vector<16x16xf32> to vector<1x16x16xf32>
      tpu.vector_store %arg7[%c0_112, %c112_113, %c112_114], %153 {strides = array<i32>} : memref<3x256x256xf32, #tpu.memory_space<vmem>>, vector<1x16x16xf32>,
      %154 = vector.extract_strided_slice %31 {offsets = [1, 0, 0], sizes = [1, 16, 16], strides = [1, 1, 1]} : vector<3x16x16xf32> to vector<1x16x16xf32>
      %155 = vector.shape_cast %154 : vector<1x16x16xf32> to vector<16x16xf32>
      %c1_115 = arith.constant 1 : index
      %c112_116 = arith.constant 112 : index
      %c112_117 = arith.constant 112 : index
      %156 = vector.load %arg7[%c1_115, %c112_116, %c112_117] : memref<3x256x256xf32, #tpu.memory_space<vmem>>, vector<1x16x16xf32>
      %157 = vector.shape_cast %156 : vector<1x16x16xf32> to vector<16x16xf32>
      %158 = vector.shape_cast %155 : vector<16x16xf32> to vector<1x16x16xf32>
      tpu.vector_store %arg7[%c1_115, %c112_116, %c112_117], %158 {strides = array<i32>} : memref<3x256x256xf32, #tpu.memory_space<vmem>>, vector<1x16x16xf32>,
      %159 = vector.extract_strided_slice %31 {offsets = [2, 0, 0], sizes = [1, 16, 16], strides = [1, 1, 1]} : vector<3x16x16xf32> to vector<1x16x16xf32>
      %160 = vector.shape_cast %159 : vector<1x16x16xf32> to vector<16x16xf32>
      %c2_118 = arith.constant 2 : index
      %c112_119 = arith.constant 112 : index
      %c112_120 = arith.constant 112 : index
      %161 = vector.load %arg7[%c2_118, %c112_119, %c112_120] : memref<3x256x256xf32, #tpu.memory_space<vmem>>, vector<1x16x16xf32>
      %162 = vector.shape_cast %161 : vector<1x16x16xf32> to vector<16x16xf32>
      %163 = vector.shape_cast %160 : vector<16x16xf32> to vector<1x16x16xf32>
      tpu.vector_store %arg7[%c2_118, %c112_119, %c112_120], %163 {strides = array<i32>} : memref<3x256x256xf32, #tpu.memory_space<vmem>>, vector<1x16x16xf32>,
      %c0_121 = arith.constant 0 : index
      %c128 = arith.constant 128 : index
      %164 = vector.load %arg8[%c0_121, %c128] : memref<8x256xf32, #tpu.memory_space<vmem>>, vector<8x16xf32>
      tpu.vector_store %arg8[%c0_121, %c128], %33 {strides = array<i32>} : memref<8x256xf32, #tpu.memory_space<vmem>>, vector<8x16xf32>,
      %165 = vector.extract_strided_slice %31 {offsets = [0, 0, 0], sizes = [1, 16, 16], strides = [1, 1, 1]} : vector<3x16x16xf32> to vector<1x16x16xf32>
      %166 = vector.shape_cast %165 : vector<1x16x16xf32> to vector<16x16xf32>
      %c0_122 = arith.constant 0 : index
      %c128_123 = arith.constant 128 : index
      %c128_124 = arith.constant 128 : index
      %167 = vector.load %arg7[%c0_122, %c128_123, %c128_124] : memref<3x256x256xf32, #tpu.memory_space<vmem>>, vector<1x16x16xf32>
      %168 = vector.shape_cast %167 : vector<1x16x16xf32> to vector<16x16xf32>
      %169 = vector.shape_cast %166 : vector<16x16xf32> to vector<1x16x16xf32>
      tpu.vector_store %arg7[%c0_122, %c128_123, %c128_124], %169 {strides = array<i32>} : memref<3x256x256xf32, #tpu.memory_space<vmem>>, vector<1x16x16xf32>,
      %170 = vector.extract_strided_slice %31 {offsets = [1, 0, 0], sizes = [1, 16, 16], strides = [1, 1, 1]} : vector<3x16x16xf32> to vector<1x16x16xf32>
      %171 = vector.shape_cast %170 : vector<1x16x16xf32> to vector<16x16xf32>
      %c1_125 = arith.constant 1 : index
      %c128_126 = arith.constant 128 : index
      %c128_127 = arith.constant 128 : index
      %172 = vector.load %arg7[%c1_125, %c128_126, %c128_127] : memref<3x256x256xf32, #tpu.memory_space<vmem>>, vector<1x16x16xf32>
      %173 = vector.shape_cast %172 : vector<1x16x16xf32> to vector<16x16xf32>
      %174 = vector.shape_cast %171 : vector<16x16xf32> to vector<1x16x16xf32>
      tpu.vector_store %arg7[%c1_125, %c128_126, %c128_127], %174 {strides = array<i32>} : memref<3x256x256xf32, #tpu.memory_space<vmem>>, vector<1x16x16xf32>,
      %175 = vector.extract_strided_slice %31 {offsets = [2, 0, 0], sizes = [1, 16, 16], strides = [1, 1, 1]} : vector<3x16x16xf32> to vector<1x16x16xf32>
      %176 = vector.shape_cast %175 : vector<1x16x16xf32> to vector<16x16xf32>
      %c2_128 = arith.constant 2 : index
      %c128_129 = arith.constant 128 : index
      %c128_130 = arith.constant 128 : index
      %177 = vector.load %arg7[%c2_128, %c128_129, %c128_130] : memref<3x256x256xf32, #tpu.memory_space<vmem>>, vector<1x16x16xf32>
      %178 = vector.shape_cast %177 : vector<1x16x16xf32> to vector<16x16xf32>
      %179 = vector.shape_cast %176 : vector<16x16xf32> to vector<1x16x16xf32>
      tpu.vector_store %arg7[%c2_128, %c128_129, %c128_130], %179 {strides = array<i32>} : memref<3x256x256xf32, #tpu.memory_space<vmem>>, vector<1x16x16xf32>,
      %c0_131 = arith.constant 0 : index
      %c144 = arith.constant 144 : index
      %180 = vector.load %arg8[%c0_131, %c144] : memref<8x256xf32, #tpu.memory_space<vmem>>, vector<8x16xf32>
      tpu.vector_store %arg8[%c0_131, %c144], %33 {strides = array<i32>} : memref<8x256xf32, #tpu.memory_space<vmem>>, vector<8x16xf32>,
      %181 = vector.extract_strided_slice %31 {offsets = [0, 0, 0], sizes = [1, 16, 16], strides = [1, 1, 1]} : vector<3x16x16xf32> to vector<1x16x16xf32>
      %182 = vector.shape_cast %181 : vector<1x16x16xf32> to vector<16x16xf32>
      %c0_132 = arith.constant 0 : index
      %c144_133 = arith.constant 144 : index
      %c144_134 = arith.constant 144 : index
      %183 = vector.load %arg7[%c0_132, %c144_133, %c144_134] : memref<3x256x256xf32, #tpu.memory_space<vmem>>, vector<1x16x16xf32>
      %184 = vector.shape_cast %183 : vector<1x16x16xf32> to vector<16x16xf32>
      %185 = vector.shape_cast %182 : vector<16x16xf32> to vector<1x16x16xf32>
      tpu.vector_store %arg7[%c0_132, %c144_133, %c144_134], %185 {strides = array<i32>} : memref<3x256x256xf32, #tpu.memory_space<vmem>>, vector<1x16x16xf32>,
      %186 = vector.extract_strided_slice %31 {offsets = [1, 0, 0], sizes = [1, 16, 16], strides = [1, 1, 1]} : vector<3x16x16xf32> to vector<1x16x16xf32>
      %187 = vector.shape_cast %186 : vector<1x16x16xf32> to vector<16x16xf32>
      %c1_135 = arith.constant 1 : index
      %c144_136 = arith.constant 144 : index
      %c144_137 = arith.constant 144 : index
      %188 = vector.load %arg7[%c1_135, %c144_136, %c144_137] : memref<3x256x256xf32, #tpu.memory_space<vmem>>, vector<1x16x16xf32>
      %189 = vector.shape_cast %188 : vector<1x16x16xf32> to vector<16x16xf32>
      %190 = vector.shape_cast %187 : vector<16x16xf32> to vector<1x16x16xf32>
      tpu.vector_store %arg7[%c1_135, %c144_136, %c144_137], %190 {strides = array<i32>} : memref<3x256x256xf32, #tpu.memory_space<vmem>>, vector<1x16x16xf32>,
      %191 = vector.extract_strided_slice %31 {offsets = [2, 0, 0], sizes = [1, 16, 16], strides = [1, 1, 1]} : vector<3x16x16xf32> to vector<1x16x16xf32>
      %192 = vector.shape_cast %191 : vector<1x16x16xf32> to vector<16x16xf32>
      %c2_138 = arith.constant 2 : index
      %c144_139 = arith.constant 144 : index
      %c144_140 = arith.constant 144 : index
      %193 = vector.load %arg7[%c2_138, %c144_139, %c144_140] : memref<3x256x256xf32, #tpu.memory_space<vmem>>, vector<1x16x16xf32>
      %194 = vector.shape_cast %193 : vector<1x16x16xf32> to vector<16x16xf32>
      %195 = vector.shape_cast %192 : vector<16x16xf32> to vector<1x16x16xf32>
      tpu.vector_store %arg7[%c2_138, %c144_139, %c144_140], %195 {strides = array<i32>} : memref<3x256x256xf32, #tpu.memory_space<vmem>>, vector<1x16x16xf32>,
      %c0_141 = arith.constant 0 : index
      %c160 = arith.constant 160 : index
      %196 = vector.load %arg8[%c0_141, %c160] : memref<8x256xf32, #tpu.memory_space<vmem>>, vector<8x16xf32>
      tpu.vector_store %arg8[%c0_141, %c160], %33 {strides = array<i32>} : memref<8x256xf32, #tpu.memory_space<vmem>>, vector<8x16xf32>,
      %197 = vector.extract_strided_slice %31 {offsets = [0, 0, 0], sizes = [1, 16, 16], strides = [1, 1, 1]} : vector<3x16x16xf32> to vector<1x16x16xf32>
      %198 = vector.shape_cast %197 : vector<1x16x16xf32> to vector<16x16xf32>
      %c0_142 = arith.constant 0 : index
      %c160_143 = arith.constant 160 : index
      %c160_144 = arith.constant 160 : index
      %199 = vector.load %arg7[%c0_142, %c160_143, %c160_144] : memref<3x256x256xf32, #tpu.memory_space<vmem>>, vector<1x16x16xf32>
      %200 = vector.shape_cast %199 : vector<1x16x16xf32> to vector<16x16xf32>
      %201 = vector.shape_cast %198 : vector<16x16xf32> to vector<1x16x16xf32>
      tpu.vector_store %arg7[%c0_142, %c160_143, %c160_144], %201 {strides = array<i32>} : memref<3x256x256xf32, #tpu.memory_space<vmem>>, vector<1x16x16xf32>,
      %202 = vector.extract_strided_slice %31 {offsets = [1, 0, 0], sizes = [1, 16, 16], strides = [1, 1, 1]} : vector<3x16x16xf32> to vector<1x16x16xf32>
      %203 = vector.shape_cast %202 : vector<1x16x16xf32> to vector<16x16xf32>
      %c1_145 = arith.constant 1 : index
      %c160_146 = arith.constant 160 : index
      %c160_147 = arith.constant 160 : index
      %204 = vector.load %arg7[%c1_145, %c160_146, %c160_147] : memref<3x256x256xf32, #tpu.memory_space<vmem>>, vector<1x16x16xf32>
      %205 = vector.shape_cast %204 : vector<1x16x16xf32> to vector<16x16xf32>
      %206 = vector.shape_cast %203 : vector<16x16xf32> to vector<1x16x16xf32>
      tpu.vector_store %arg7[%c1_145, %c160_146, %c160_147], %206 {strides = array<i32>} : memref<3x256x256xf32, #tpu.memory_space<vmem>>, vector<1x16x16xf32>,
      %207 = vector.extract_strided_slice %31 {offsets = [2, 0, 0], sizes = [1, 16, 16], strides = [1, 1, 1]} : vector<3x16x16xf32> to vector<1x16x16xf32>
      %208 = vector.shape_cast %207 : vector<1x16x16xf32> to vector<16x16xf32>
      %c2_148 = arith.constant 2 : index
      %c160_149 = arith.constant 160 : index
      %c160_150 = arith.constant 160 : index
      %209 = vector.load %arg7[%c2_148, %c160_149, %c160_150] : memref<3x256x256xf32, #tpu.memory_space<vmem>>, vector<1x16x16xf32>
      %210 = vector.shape_cast %209 : vector<1x16x16xf32> to vector<16x16xf32>
      %211 = vector.shape_cast %208 : vector<16x16xf32> to vector<1x16x16xf32>
      tpu.vector_store %arg7[%c2_148, %c160_149, %c160_150], %211 {strides = array<i32>} : memref<3x256x256xf32, #tpu.memory_space<vmem>>, vector<1x16x16xf32>,
      %c0_151 = arith.constant 0 : index
      %c176 = arith.constant 176 : index
      %212 = vector.load %arg8[%c0_151, %c176] : memref<8x256xf32, #tpu.memory_space<vmem>>, vector<8x16xf32>
      tpu.vector_store %arg8[%c0_151, %c176], %33 {strides = array<i32>} : memref<8x256xf32, #tpu.memory_space<vmem>>, vector<8x16xf32>,
      %213 = vector.extract_strided_slice %31 {offsets = [0, 0, 0], sizes = [1, 16, 16], strides = [1, 1, 1]} : vector<3x16x16xf32> to vector<1x16x16xf32>
      %214 = vector.shape_cast %213 : vector<1x16x16xf32> to vector<16x16xf32>
      %c0_152 = arith.constant 0 : index
      %c176_153 = arith.constant 176 : index
      %c176_154 = arith.constant 176 : index
      %215 = vector.load %arg7[%c0_152, %c176_153, %c176_154] : memref<3x256x256xf32, #tpu.memory_space<vmem>>, vector<1x16x16xf32>
      %216 = vector.shape_cast %215 : vector<1x16x16xf32> to vector<16x16xf32>
      %217 = vector.shape_cast %214 : vector<16x16xf32> to vector<1x16x16xf32>
      tpu.vector_store %arg7[%c0_152, %c176_153, %c176_154], %217 {strides = array<i32>} : memref<3x256x256xf32, #tpu.memory_space<vmem>>, vector<1x16x16xf32>,
      %218 = vector.extract_strided_slice %31 {offsets = [1, 0, 0], sizes = [1, 16, 16], strides = [1, 1, 1]} : vector<3x16x16xf32> to vector<1x16x16xf32>
      %219 = vector.shape_cast %218 : vector<1x16x16xf32> to vector<16x16xf32>
      %c1_155 = arith.constant 1 : index
      %c176_156 = arith.constant 176 : index
      %c176_157 = arith.constant 176 : index
      %220 = vector.load %arg7[%c1_155, %c176_156, %c176_157] : memref<3x256x256xf32, #tpu.memory_space<vmem>>, vector<1x16x16xf32>
      %221 = vector.shape_cast %220 : vector<1x16x16xf32> to vector<16x16xf32>
      %222 = vector.shape_cast %219 : vector<16x16xf32> to vector<1x16x16xf32>
      tpu.vector_store %arg7[%c1_155, %c176_156, %c176_157], %222 {strides = array<i32>} : memref<3x256x256xf32, #tpu.memory_space<vmem>>, vector<1x16x16xf32>,
      %223 = vector.extract_strided_slice %31 {offsets = [2, 0, 0], sizes = [1, 16, 16], strides = [1, 1, 1]} : vector<3x16x16xf32> to vector<1x16x16xf32>
      %224 = vector.shape_cast %223 : vector<1x16x16xf32> to vector<16x16xf32>
      %c2_158 = arith.constant 2 : index
      %c176_159 = arith.constant 176 : index
      %c176_160 = arith.constant 176 : index
      %225 = vector.load %arg7[%c2_158, %c176_159, %c176_160] : memref<3x256x256xf32, #tpu.memory_space<vmem>>, vector<1x16x16xf32>
      %226 = vector.shape_cast %225 : vector<1x16x16xf32> to vector<16x16xf32>
      %227 = vector.shape_cast %224 : vector<16x16xf32> to vector<1x16x16xf32>
      tpu.vector_store %arg7[%c2_158, %c176_159, %c176_160], %227 {strides = array<i32>} : memref<3x256x256xf32, #tpu.memory_space<vmem>>, vector<1x16x16xf32>,
      %c0_161 = arith.constant 0 : index
      %c192 = arith.constant 192 : index
      %228 = vector.load %arg8[%c0_161, %c192] : memref<8x256xf32, #tpu.memory_space<vmem>>, vector<8x16xf32>
      tpu.vector_store %arg8[%c0_161, %c192], %33 {strides = array<i32>} : memref<8x256xf32, #tpu.memory_space<vmem>>, vector<8x16xf32>,
      %229 = vector.extract_strided_slice %31 {offsets = [0, 0, 0], sizes = [1, 16, 16], strides = [1, 1, 1]} : vector<3x16x16xf32> to vector<1x16x16xf32>
      %230 = vector.shape_cast %229 : vector<1x16x16xf32> to vector<16x16xf32>
      %c0_162 = arith.constant 0 : index
      %c192_163 = arith.constant 192 : index
      %c192_164 = arith.constant 192 : index
      %231 = vector.load %arg7[%c0_162, %c192_163, %c192_164] : memref<3x256x256xf32, #tpu.memory_space<vmem>>, vector<1x16x16xf32>
      %232 = vector.shape_cast %231 : vector<1x16x16xf32> to vector<16x16xf32>
      %233 = vector.shape_cast %230 : vector<16x16xf32> to vector<1x16x16xf32>
      tpu.vector_store %arg7[%c0_162, %c192_163, %c192_164], %233 {strides = array<i32>} : memref<3x256x256xf32, #tpu.memory_space<vmem>>, vector<1x16x16xf32>,
      %234 = vector.extract_strided_slice %31 {offsets = [1, 0, 0], sizes = [1, 16, 16], strides = [1, 1, 1]} : vector<3x16x16xf32> to vector<1x16x16xf32>
      %235 = vector.shape_cast %234 : vector<1x16x16xf32> to vector<16x16xf32>
      %c1_165 = arith.constant 1 : index
      %c192_166 = arith.constant 192 : index
      %c192_167 = arith.constant 192 : index
      %236 = vector.load %arg7[%c1_165, %c192_166, %c192_167] : memref<3x256x256xf32, #tpu.memory_space<vmem>>, vector<1x16x16xf32>
      %237 = vector.shape_cast %236 : vector<1x16x16xf32> to vector<16x16xf32>
      %238 = vector.shape_cast %235 : vector<16x16xf32> to vector<1x16x16xf32>
      tpu.vector_store %arg7[%c1_165, %c192_166, %c192_167], %238 {strides = array<i32>} : memref<3x256x256xf32, #tpu.memory_space<vmem>>, vector<1x16x16xf32>,
      %239 = vector.extract_strided_slice %31 {offsets = [2, 0, 0], sizes = [1, 16, 16], strides = [1, 1, 1]} : vector<3x16x16xf32> to vector<1x16x16xf32>
      %240 = vector.shape_cast %239 : vector<1x16x16xf32> to vector<16x16xf32>
      %c2_168 = arith.constant 2 : index
      %c192_169 = arith.constant 192 : index
      %c192_170 = arith.constant 192 : index
      %241 = vector.load %arg7[%c2_168, %c192_169, %c192_170] : memref<3x256x256xf32, #tpu.memory_space<vmem>>, vector<1x16x16xf32>
      %242 = vector.shape_cast %241 : vector<1x16x16xf32> to vector<16x16xf32>
      %243 = vector.shape_cast %240 : vector<16x16xf32> to vector<1x16x16xf32>
      tpu.vector_store %arg7[%c2_168, %c192_169, %c192_170], %243 {strides = array<i32>} : memref<3x256x256xf32, #tpu.memory_space<vmem>>, vector<1x16x16xf32>,
      %c0_171 = arith.constant 0 : index
      %c208 = arith.constant 208 : index
      %244 = vector.load %arg8[%c0_171, %c208] : memref<8x256xf32, #tpu.memory_space<vmem>>, vector<8x16xf32>
      tpu.vector_store %arg8[%c0_171, %c208], %33 {strides = array<i32>} : memref<8x256xf32, #tpu.memory_space<vmem>>, vector<8x16xf32>,
      %245 = vector.extract_strided_slice %31 {offsets = [0, 0, 0], sizes = [1, 16, 16], strides = [1, 1, 1]} : vector<3x16x16xf32> to vector<1x16x16xf32>
      %246 = vector.shape_cast %245 : vector<1x16x16xf32> to vector<16x16xf32>
      %c0_172 = arith.constant 0 : index
      %c208_173 = arith.constant 208 : index
      %c208_174 = arith.constant 208 : index
      %247 = vector.load %arg7[%c0_172, %c208_173, %c208_174] : memref<3x256x256xf32, #tpu.memory_space<vmem>>, vector<1x16x16xf32>
      %248 = vector.shape_cast %247 : vector<1x16x16xf32> to vector<16x16xf32>
      %249 = vector.shape_cast %246 : vector<16x16xf32> to vector<1x16x16xf32>
      tpu.vector_store %arg7[%c0_172, %c208_173, %c208_174], %249 {strides = array<i32>} : memref<3x256x256xf32, #tpu.memory_space<vmem>>, vector<1x16x16xf32>,
      %250 = vector.extract_strided_slice %31 {offsets = [1, 0, 0], sizes = [1, 16, 16], strides = [1, 1, 1]} : vector<3x16x16xf32> to vector<1x16x16xf32>
      %251 = vector.shape_cast %250 : vector<1x16x16xf32> to vector<16x16xf32>
      %c1_175 = arith.constant 1 : index
      %c208_176 = arith.constant 208 : index
      %c208_177 = arith.constant 208 : index
      %252 = vector.load %arg7[%c1_175, %c208_176, %c208_177] : memref<3x256x256xf32, #tpu.memory_space<vmem>>, vector<1x16x16xf32>
      %253 = vector.shape_cast %252 : vector<1x16x16xf32> to vector<16x16xf32>
      %254 = vector.shape_cast %251 : vector<16x16xf32> to vector<1x16x16xf32>
      tpu.vector_store %arg7[%c1_175, %c208_176, %c208_177], %254 {strides = array<i32>} : memref<3x256x256xf32, #tpu.memory_space<vmem>>, vector<1x16x16xf32>,
      %255 = vector.extract_strided_slice %31 {offsets = [2, 0, 0], sizes = [1, 16, 16], strides = [1, 1, 1]} : vector<3x16x16xf32> to vector<1x16x16xf32>
      %256 = vector.shape_cast %255 : vector<1x16x16xf32> to vector<16x16xf32>
      %c2_178 = arith.constant 2 : index
      %c208_179 = arith.constant 208 : index
      %c208_180 = arith.constant 208 : index
      %257 = vector.load %arg7[%c2_178, %c208_179, %c208_180] : memref<3x256x256xf32, #tpu.memory_space<vmem>>, vector<1x16x16xf32>
      %258 = vector.shape_cast %257 : vector<1x16x16xf32> to vector<16x16xf32>
      %259 = vector.shape_cast %256 : vector<16x16xf32> to vector<1x16x16xf32>
      tpu.vector_store %arg7[%c2_178, %c208_179, %c208_180], %259 {strides = array<i32>} : memref<3x256x256xf32, #tpu.memory_space<vmem>>, vector<1x16x16xf32>,
      %c0_181 = arith.constant 0 : index
      %c224 = arith.constant 224 : index
      %260 = vector.load %arg8[%c0_181, %c224] : memref<8x256xf32, #tpu.memory_space<vmem>>, vector<8x16xf32>
      tpu.vector_store %arg8[%c0_181, %c224], %33 {strides = array<i32>} : memref<8x256xf32, #tpu.memory_space<vmem>>, vector<8x16xf32>,
      %261 = vector.extract_strided_slice %31 {offsets = [0, 0, 0], sizes = [1, 16, 16], strides = [1, 1, 1]} : vector<3x16x16xf32> to vector<1x16x16xf32>
      %262 = vector.shape_cast %261 : vector<1x16x16xf32> to vector<16x16xf32>
      %c0_182 = arith.constant 0 : index
      %c224_183 = arith.constant 224 : index
      %c224_184 = arith.constant 224 : index
      %263 = vector.load %arg7[%c0_182, %c224_183, %c224_184] : memref<3x256x256xf32, #tpu.memory_space<vmem>>, vector<1x16x16xf32>
      %264 = vector.shape_cast %263 : vector<1x16x16xf32> to vector<16x16xf32>
      %265 = vector.shape_cast %262 : vector<16x16xf32> to vector<1x16x16xf32>
      tpu.vector_store %arg7[%c0_182, %c224_183, %c224_184], %265 {strides = array<i32>} : memref<3x256x256xf32, #tpu.memory_space<vmem>>, vector<1x16x16xf32>,
      %266 = vector.extract_strided_slice %31 {offsets = [1, 0, 0], sizes = [1, 16, 16], strides = [1, 1, 1]} : vector<3x16x16xf32> to vector<1x16x16xf32>
      %267 = vector.shape_cast %266 : vector<1x16x16xf32> to vector<16x16xf32>
      %c1_185 = arith.constant 1 : index
      %c224_186 = arith.constant 224 : index
      %c224_187 = arith.constant 224 : index
      %268 = vector.load %arg7[%c1_185, %c224_186, %c224_187] : memref<3x256x256xf32, #tpu.memory_space<vmem>>, vector<1x16x16xf32>
      %269 = vector.shape_cast %268 : vector<1x16x16xf32> to vector<16x16xf32>
      %270 = vector.shape_cast %267 : vector<16x16xf32> to vector<1x16x16xf32>
      tpu.vector_store %arg7[%c1_185, %c224_186, %c224_187], %270 {strides = array<i32>} : memref<3x256x256xf32, #tpu.memory_space<vmem>>, vector<1x16x16xf32>,
      %271 = vector.extract_strided_slice %31 {offsets = [2, 0, 0], sizes = [1, 16, 16], strides = [1, 1, 1]} : vector<3x16x16xf32> to vector<1x16x16xf32>
      %272 = vector.shape_cast %271 : vector<1x16x16xf32> to vector<16x16xf32>
      %c2_188 = arith.constant 2 : index
      %c224_189 = arith.constant 224 : index
      %c224_190 = arith.constant 224 : index
      %273 = vector.load %arg7[%c2_188, %c224_189, %c224_190] : memref<3x256x256xf32, #tpu.memory_space<vmem>>, vector<1x16x16xf32>
      %274 = vector.shape_cast %273 : vector<1x16x16xf32> to vector<16x16xf32>
      %275 = vector.shape_cast %272 : vector<16x16xf32> to vector<1x16x16xf32>
      tpu.vector_store %arg7[%c2_188, %c224_189, %c224_190], %275 {strides = array<i32>} : memref<3x256x256xf32, #tpu.memory_space<vmem>>, vector<1x16x16xf32>,
      %c0_191 = arith.constant 0 : index
      %c240 = arith.constant 240 : index
      %276 = vector.load %arg8[%c0_191, %c240] : memref<8x256xf32, #tpu.memory_space<vmem>>, vector<8x16xf32>
      tpu.vector_store %arg8[%c0_191, %c240], %33 {strides = array<i32>} : memref<8x256xf32, #tpu.memory_space<vmem>>, vector<8x16xf32>,
      %277 = vector.extract_strided_slice %31 {offsets = [0, 0, 0], sizes = [1, 16, 16], strides = [1, 1, 1]} : vector<3x16x16xf32> to vector<1x16x16xf32>
      %278 = vector.shape_cast %277 : vector<1x16x16xf32> to vector<16x16xf32>
      %c0_192 = arith.constant 0 : index
      %c240_193 = arith.constant 240 : index
      %c240_194 = arith.constant 240 : index
      %279 = vector.load %arg7[%c0_192, %c240_193, %c240_194] : memref<3x256x256xf32, #tpu.memory_space<vmem>>, vector<1x16x16xf32>
      %280 = vector.shape_cast %279 : vector<1x16x16xf32> to vector<16x16xf32>
      %281 = vector.shape_cast %278 : vector<16x16xf32> to vector<1x16x16xf32>
      tpu.vector_store %arg7[%c0_192, %c240_193, %c240_194], %281 {strides = array<i32>} : memref<3x256x256xf32, #tpu.memory_space<vmem>>, vector<1x16x16xf32>,
      %282 = vector.extract_strided_slice %31 {offsets = [1, 0, 0], sizes = [1, 16, 16], strides = [1, 1, 1]} : vector<3x16x16xf32> to vector<1x16x16xf32>
      %283 = vector.shape_cast %282 : vector<1x16x16xf32> to vector<16x16xf32>
      %c1_195 = arith.constant 1 : index
      %c240_196 = arith.constant 240 : index
      %c240_197 = arith.constant 240 : index
      %284 = vector.load %arg7[%c1_195, %c240_196, %c240_197] : memref<3x256x256xf32, #tpu.memory_space<vmem>>, vector<1x16x16xf32>
      %285 = vector.shape_cast %284 : vector<1x16x16xf32> to vector<16x16xf32>
      %286 = vector.shape_cast %283 : vector<16x16xf32> to vector<1x16x16xf32>
      tpu.vector_store %arg7[%c1_195, %c240_196, %c240_197], %286 {strides = array<i32>} : memref<3x256x256xf32, #tpu.memory_space<vmem>>, vector<1x16x16xf32>,
      %287 = vector.extract_strided_slice %31 {offsets = [2, 0, 0], sizes = [1, 16, 16], strides = [1, 1, 1]} : vector<3x16x16xf32> to vector<1x16x16xf32>
      %288 = vector.shape_cast %287 : vector<1x16x16xf32> to vector<16x16xf32>
      %c2_198 = arith.constant 2 : index
      %c240_199 = arith.constant 240 : index
      %c240_200 = arith.constant 240 : index
      %289 = vector.load %arg7[%c2_198, %c240_199, %c240_200] : memref<3x256x256xf32, #tpu.memory_space<vmem>>, vector<1x16x16xf32>
      %290 = vector.shape_cast %289 : vector<1x16x16xf32> to vector<16x16xf32>
      %291 = vector.shape_cast %288 : vector<16x16xf32> to vector<1x16x16xf32>
      tpu.vector_store %arg7[%c2_198, %c240_199, %c240_200], %291 {strides = array<i32>} : memref<3x256x256xf32, #tpu.memory_space<vmem>>, vector<1x16x16xf32>,
    } else {
    }
    %c0 = arith.constant 0 : index
    %c0_1 = arith.constant 0 : index
    %c0_2 = arith.constant 0 : index
    %3 = vector.load %arg2[%c0, %c0_1, %c0_2] : memref<1x4x256xf32, #tpu.memory_space<vmem>>, vector<1x4x256xf32>
    %4 = vector.shape_cast %3 : vector<1x4x256xf32> to vector<4x256xf32>
    %c0_3 = arith.constant 0 : index
    %c0_4 = arith.constant 0 : index
    %5 = vector.load %arg8[%c0_3, %c0_4] : memref<8x256xf32, #tpu.memory_space<vmem>>, vector<8x256xf32>
    %c0_5 = arith.constant 0 : index
    %c0_6 = arith.constant 0 : index
    %c0_7 = arith.constant 0 : index
    %6 = vector.load %arg7[%c0_5, %c0_6, %c0_7] : memref<3x256x256xf32, #tpu.memory_space<vmem>>, vector<1x256x256xf32>
    %7 = vector.shape_cast %6 : vector<1x256x256xf32> to vector<256x256xf32>
    %cst = arith.constant dense<0.000000e+00> : vector<4x256xf32>
    %8 = tpu.matmul %4, %7, %cst {dimension_numbers = #tpu.dot_dimension_numbers<[1], [0], [0], [1], [0, 0, 1, 1], [], []>} : vector<4x256xf32>, vector<256x256xf32>, vector<4x256xf32> -> vector<4x256xf32>
    %c0_8 = arith.constant 0 : index
    %c0_9 = arith.constant 0 : index
    %c0_10 = arith.constant 0 : index
    %9 = vector.load %arg3[%c0_8, %c0_9, %c0_10] : memref<3x8x4xf32, #tpu.memory_space<vmem>>, vector<1x8x4xf32>
    %10 = vector.shape_cast %9 : vector<1x8x4xf32> to vector<8x4xf32>
    %cst_11 = arith.constant dense<0.000000e+00> : vector<8x256xf32>
    %11 = tpu.matmul %10, %8, %cst_11 {dimension_numbers = #tpu.dot_dimension_numbers<[1], [0], [0], [1], [0, 0, 1, 1], [], []>} : vector<8x4xf32>, vector<4x256xf32>, vector<8x256xf32> -> vector<8x256xf32>
    %12 = arith.addf %5, %11 : vector<8x256xf32>
    %c1 = arith.constant 1 : index
    %c0_12 = arith.constant 0 : index
    %c0_13 = arith.constant 0 : index
    %13 = vector.load %arg7[%c1, %c0_12, %c0_13] : memref<3x256x256xf32, #tpu.memory_space<vmem>>, vector<1x256x256xf32>
    %14 = vector.shape_cast %13 : vector<1x256x256xf32> to vector<256x256xf32>
    %cst_14 = arith.constant dense<0.000000e+00> : vector<4x256xf32>
    %15 = tpu.matmul %4, %14, %cst_14 {dimension_numbers = #tpu.dot_dimension_numbers<[1], [0], [0], [1], [0, 0, 1, 1], [], []>} : vector<4x256xf32>, vector<256x256xf32>, vector<4x256xf32> -> vector<4x256xf32>
    %c1_15 = arith.constant 1 : index
    %c0_16 = arith.constant 0 : index
    %c0_17 = arith.constant 0 : index
    %16 = vector.load %arg3[%c1_15, %c0_16, %c0_17] : memref<3x8x4xf32, #tpu.memory_space<vmem>>, vector<1x8x4xf32>
    %17 = vector.shape_cast %16 : vector<1x8x4xf32> to vector<8x4xf32>
    %cst_18 = arith.constant dense<0.000000e+00> : vector<8x256xf32>
    %18 = tpu.matmul %17, %15, %cst_18 {dimension_numbers = #tpu.dot_dimension_numbers<[1], [0], [0], [1], [0, 0, 1, 1], [], []>} : vector<8x4xf32>, vector<4x256xf32>, vector<8x256xf32> -> vector<8x256xf32>
    %19 = arith.addf %12, %18 : vector<8x256xf32>
    %c2 = arith.constant 2 : index
    %c0_19 = arith.constant 0 : index
    %c0_20 = arith.constant 0 : index
    %20 = vector.load %arg7[%c2, %c0_19, %c0_20] : memref<3x256x256xf32, #tpu.memory_space<vmem>>, vector<1x256x256xf32>
    %21 = vector.shape_cast %20 : vector<1x256x256xf32> to vector<256x256xf32>
    %cst_21 = arith.constant dense<0.000000e+00> : vector<4x256xf32>
    %22 = tpu.matmul %4, %21, %cst_21 {dimension_numbers = #tpu.dot_dimension_numbers<[1], [0], [0], [1], [0, 0, 1, 1], [], []>} : vector<4x256xf32>, vector<256x256xf32>, vector<4x256xf32> -> vector<4x256xf32>
    %c2_22 = arith.constant 2 : index
    %c0_23 = arith.constant 0 : index
    %c0_24 = arith.constant 0 : index
    %23 = vector.load %arg3[%c2_22, %c0_23, %c0_24] : memref<3x8x4xf32, #tpu.memory_space<vmem>>, vector<1x8x4xf32>
    %24 = vector.shape_cast %23 : vector<1x8x4xf32> to vector<8x4xf32>
    %cst_25 = arith.constant dense<0.000000e+00> : vector<8x256xf32>
    %25 = tpu.matmul %24, %22, %cst_25 {dimension_numbers = #tpu.dot_dimension_numbers<[1], [0], [0], [1], [0, 0, 1, 1], [], []>} : vector<8x4xf32>, vector<4x256xf32>, vector<8x256xf32> -> vector<8x256xf32>
    %26 = arith.addf %19, %25 : vector<8x256xf32>
    %c0_26 = arith.constant 0 : index
    %c0_27 = arith.constant 0 : index
    %c0_28 = arith.constant 0 : index
    %27 = vector.load %arg6[%c0_26, %c0_27, %c0_28] : memref<1x8x256xf32, #tpu.memory_space<vmem>>, vector<1x8x256xf32>
    %28 = vector.shape_cast %27 : vector<1x8x256xf32> to vector<8x256xf32>
    %29 = vector.shape_cast %26 : vector<8x256xf32> to vector<1x8x256xf32>
    tpu.vector_store %arg6[%c0_26, %c0_27, %c0_28], %29 {strides = array<i32>} : memref<1x8x256xf32, #tpu.memory_space<vmem>>, vector<1x8x256xf32>,
    return
  }
  func.func @transform_0(%arg0: i32, %arg1: i32) -> (i32, i32, i32) {
    %c0_i32 = arith.constant 0 : i32
    %c0_i32_0 = arith.constant 0 : i32
    return %arg0, %c0_i32, %arg1 : i32, i32, i32
  }
  func.func @transform_1(%arg0: i32, %arg1: i32) -> (i32, i32, i32) {
    %c0_i32 = arith.constant 0 : i32
    %c0_i32_0 = arith.constant 0 : i32
    %c0_i32_1 = arith.constant 0 : i32
    %c0_i32_2 = arith.constant 0 : i32
    return %c0_i32, %c0_i32_0, %c0_i32_1 : i32, i32, i32
  }
  func.func @transform_2(%arg0: i32, %arg1: i32) -> (i32, i32, i32, i32) {
    %c0_i32 = arith.constant 0 : i32
    %c0_i32_0 = arith.constant 0 : i32
    %c0_i32_1 = arith.constant 0 : i32
    %c0_i32_2 = arith.constant 0 : i32
    return %arg0, %c0_i32, %c0_i32_0, %c0_i32_1 : i32, i32, i32, i32
  }
  func.func @transform_3(%arg0: i32, %arg1: i32) -> (i32, i32, i32) {
    %c0_i32 = arith.constant 0 : i32
    %c0_i32_0 = arith.constant 0 : i32
    %c0_i32_1 = arith.constant 0 : i32
    return %arg0, %c0_i32, %c0_i32_0 : i32, i32, i32
  }
  func.func @transform_4(%arg0: i32, %arg1: i32) -> (i32, i32, i32) {
    %c0_i32 = arith.constant 0 : i32
    %c0_i32_0 = arith.constant 0 : i32
    return %arg0, %c0_i32, %arg1 : i32, i32, i32
  }
}

</mosaic_0001>

<bundles_post_ra>
// kernel: tpu_custom_call.1
= control target key start
LH: loop header
LB: loop body
LE: loop exit
PB: predicated region body
PF: predicated region fallthrough
CT: control target
= control target key end

     0   :  { %9 = vsyncpa [#allocation5], 0  ;;  %s2560_s0 = inlined_call_operand.vmem [shape: f32[2,4,256], index: 0, kind: input, shape index: {}]   ;;  %s2561_s1 = inlined_call_operand.vmem [shape: f32[3,8,4], index: 1, kind: input, shape index: {}]   ;;  %s2562_s2 = inlined_call_operand.hbm [shape: f32[2,3,16,16], index: 2, kind: input, shape index: {}]   ;;  %s2563_s3 = inlined_call_operand.vmem [shape: f32[2,8,16], index: 3, kind: input, shape index: {}]   ;;  %s2564_s4 = inlined_call_operand.hbm [shape: f32[2,8,256], index: 4, kind: output, shape index: {}]  }
   0x1   :  { %11 = vsyncpa [#allocation5 + $0x1], 0 }
   0x2   :  { %12 = vsyncpa [#allocation6], 0 }
   0x3   :  { %14 = vsyncpa [#allocation6 + $0x1], 0  ;;  %s2014_s15 = smov 0   ;;  %s2016_s16 = smov 0  }
   0x4   :  { %s2018_s17 = smov 0   ;;  %s2020_s18 = smov 0  }
   0x5   :  { %s2022_s19 = smov 0   ;;  %s2024_s20 = smov 0  }
   0x6 LB: > { %s1559_s21 = sadd.s32 4294967295, %s1974_s20   ;;  %s1560_s22 = sadd.s32 4294967294, %s1974_s20   ;;  %s1974_s20 = sphi %s2024_s20, %s20_s20   ;;  %s1970_s19 = sphi %s2022_s19, %s2582_s19   ;;  %s1966_s18 = sphi %s2020_s18, %s2581_s18   ;;  %s1962_s17 = sphi %s2018_s17, %s2580_s17   ;;  %s1958_s16 = sphi %s2016_s16, %s2579_s16   ;;  %s1954_s15 = sphi %s2014_s15, %s2578_s15  }
   0x7   : > { %s32_s23 = sadd.s32 1, %s1970_s19  ;;  %s88_s24 = sadd.s32 1, %s1962_s17 }
   0x8   : > { %p34_p0 = scmp.ge.s32.totalorder %s32_s23, 2  ;;  %p95_p1 = scmp.ne.s32.totalorder %s1962_s17, %s1958_s16 }
   0x9   : > { %p96_p2 = scmp.eq.s32.totalorder %s1974_s20, 0  ;;  %p101_p3 = scmp.ne.s32.totalorder %s1958_s16, %s1954_s15 }
   0xa   : > { %s2584_s23 = smov (%p34_p0, %s32_s23), 0  ;;  %p102_p5 = scmp.eq.s32.totalorder %s1559_s21, 0 }
   0xb   : > { %p2055_p4 = por %p96_p2, %p95_p1  ;;  %s85_s26 = ssub.s32 %s1970_s19, %s2584_s23 }
   0xc   : > { %p153_p6 = scmp.eq.s32.totalorder %s1559_s21, 1  ;;  %p86_p7 = scmp.eq.s32.totalorder %s85_s26, 0 }
   0xd   : > { %p2061_p8 = por %p102_p5, %p101_p3  ;;  %p159_p10 = scmp.eq.s32.totalorder %s1560_s22, 1 }
   0xe   : > { %p2065_p9 = por %p153_p6, %p95_p1  ;;  %p1800_p13 = scmp.lt.s32.totalorder %s1974_s20, 2 }
   0xf   : > { %s2070_s29 = scalar_select %p86_p7, %s1962_s17, %s88_s24  }
  0x10   : > { %s2570_s28 = scalar_select %p2065_p9, 1, 0 }
  0x11   : > { %p2072_p11 = por %p159_p10, %p101_p3  ;;  %s195_s5 = sand.u32 1, %s1962_s17  }
  0x12   : > { %s1785_s6 = smul.u32 48, %s195_s5  ;;  %p2082_p0 = pnand %p1800_p13, %p2055_p4 }
  0x13   : > { %s2571_s30 = scalar_select %p2072_p11, 1, 0 }
  0x14   : > { %s1786_s7 = smul.u32 768, %s1970_s19  ;;  %s199_s12 = scalar_lea.vmem [#allocation4], %s1785_s6 }
  0x15   : > { %s206_s13 = sshll.u32 %s199_s12, 4  ;;  %s2094_s14 = scalar_lea.sflag [#allocation5], %s195_s5  ;;  %s2091_s13 = int_to_ptr.vmem [resolvable:$true] %s206_s13 }
  0x16   : > { %s2089_s11 = scalar_lea.hbm %s2562_s2, %s1786_s7  ;;  %p1864_p3 = pneg %p2082_p0 }
  0x17   : > { %s1862_s21 = scalar_lea.hbm %s2089_s11, 768  ;;  %s1867_s25 = scalar_lea.hbm %s2562_s2, 1536 }
  0x18   : > { %p1863_p2 = scmp.ne.s32.totalorder %s2089_s11, %s1862_s21  ;;  %p1868_p6 = scmp.lt.u32.totalorder %s2089_s11, %s2562_s2 }
  0x19   : > { %p1869_p7 = scmp.lt.u32.totalorder %s1867_s25, %s1862_s21  ;;  %p1871_p13 = scmp.lt.u32.totalorder %s1862_s21, %s2089_s11 }
  0x1a   : > { %p1865_p4 = pnand %p1864_p3, %p1863_p2 }
  0x1b   : > { %p1870_p10 = por %p1869_p7, %p1868_p6 }
  0x1c   : > { %p1866_p5 = pneg %p1865_p4 }
  0x1d   : > { %p1872_p12 = por %p1871_p13, %p1870_p10 }
  0x1f   : > { %p1873_p1 = pnand %p1872_p12, %p1866_p5 }
  0x21   : > { %1876 = shalt.err (!%p1873_p1)
}
  0x22   : > { %s1877_s5 = scalar_lea.vmem %s2091_s13, 768  ;;  %s1976_s7 = smov [#allocation4]  }
  0x23   : > { %p1878_p2 = scmp.ne.s32.totalorder %s2091_s13, %s1877_s5  ;;  %s1882_s9 = sshll.u32 %s1976_s7, 4  ;;  %s1883_s9 = int_to_ptr.vmem [resolvable:$false] %s1882_s9 }
  0x24   : > { %s1884_s10 = scalar_lea.vmem %s1883_s9, 1536  ;;  %p1885_p9 = scmp.lt.s32.totalorder %s2091_s13, %s1883_s9 }
  0x25   : > { %p1880_p4 = pnand %p1878_p2, %p1864_p3  ;;  %p1886_p6 = scmp.lt.s32.totalorder %s1884_s10, %s1877_s5 }
  0x27   : > { %p1881_p11 = pneg %p1880_p4  ;;  %p1887_p7 = por %p1886_p6, %p1885_p9 }
  0x29   : > { %p1888_p10 = pnand %p1887_p7, %p1881_p11 }
  0x2b   : > { %1891 = shalt.err (!%p1888_p10)
}
  0x2c   : > { %s1977_s12 = smov 128   ;;  %s1978_s21 = smov 8  }
  0x2d   : > { %1795 = dma.hbm_to_vmem [thread:$0]  (!%p2082_p0), %s2089_s11, 768, %s2091_s13, %s2094_s14, %s1977_s12, %s1977_s12, %s1978_s21  }
  0x2e   : > { %p221_p12 = scmp.lt.s32.totalorder %s1974_s20, 3  ;;  %p2573_p1 = scmp.ge.s32.totalorder %s1974_s20, 1 }
  0x30   : > { %p222_p3 = pnand %p2573_p1, %p221_p12 }
  0x31   : > { %s2126_s22 = sand.u32 (!%p222_p3), 1, %s1958_s16  }
  0x32   : > { %225 = sbr.rel (%p222_p3) target bundleno = 980 (0x3d4), region = 36  ;;  %s228_s25 = scalar_lea.sflag (!%p222_p3), [#allocation5], %s2126_s22 }
  0x33   : > { %s1787_s24 = smul.u32 (!%p222_p3), 48, %s2126_s22 }
  0x35   : > { %s2130_s26 = scalar_lea.vmem (!%p222_p3), [#allocation4], %s1787_s24 }
  0x39   : > { %1945 = dma.done.wait (%p2061_p8), %s228_s25, 768  }
  0x3a   : > { %1947 = vsyncadd (%p2061_p8), %s228_s25, 4294966528  ;;  %v1979_v0 = vmov 0.0   ;;  %v1980_v1 = vmov 0.0|0.0   ;;  %vm487_vm0 = vcmask 130048   ;;  %v288_v2 = vld [vmem:[%s2130_s26] sm:$0xff]  ;;  %v289_v3 = vld [vmem:[%s2130_s26 + $0x8] sm:$0xff] }
  0x3b   : > { %303 = vst [vmem:[#allocation2 + $0x40] sm:$0xff] %v1979_v0  ;;  %336 = vst [vmem:[#allocation2 + $0x148] sm:$0xff] %v1979_v0  ;;  %980 = vmatprep.mubr.f32.mxu1 %v1979_v0  ;;  %1588 = vmatprep.subr.bf16.mxu0 %v1980_v1  ;;  %s1981_s27 = smov 32   ;;  %s1982_s8 = smov 16   ;;  %v291_v10 = vld [vmem:[%s2130_s26 + $0x18] sm:$0xff]  ;;  %v290_v11 = vld [vmem:[%s2130_s26 + $0x10] sm:$0xff] }
  0x3c   : > { %295 = vst [vmem:[#allocation2] sm:$0xff] %v1979_v0  ;;  %296 = vst [vmem:[#allocation2 + $0x8] sm:$0xff] %v1979_v0  ;;  %538 = vrot.lane.b32.xlu1 %v288_v2, %s1981_s27  ;;  %505 = vrot.lane.b32.xlu0 %v288_v2, %s1982_s8  ;;  %s1983_s11 = smov 48   ;;  %s1984_s13 = smov 64   ;;  %v293_v12 = vld [vmem:[%s2130_s26 + $0x28] sm:$0xff]  ;;  %v292_v13 = vld [vmem:[%s2130_s26 + $0x20] sm:$0xff] }
  0x3d   : > { %297 = vst [vmem:[#allocation2 + $0x10] sm:$0xff] %v1979_v0  ;;  %299 = vst [vmem:[#allocation2 + $0x20] sm:$0xff] %v1979_v0  ;;  %s2566_s14 = smov 80   ;;  %s1986_s6 = smov 96   ;;  %vm536_vm1 = vcmask 392448   ;;  %vm501_vm2 = vcmask 261248  }
  0x3e   : > { %301 = vst [vmem:[#allocation2 + $0x30] sm:$0xff] %v1979_v0  ;;  %305 = vst [vmem:[#allocation2 + $0x50] sm:$0xff] %v1979_v0  ;;  %s1987_s5 = smov 112   ;;  %p270_p8 = scmp.lt.s32.totalorder %s1966_s18, 1  ;;  %vm565_vm3 = vcmask 523648   ;;  %vm594_vm4 = vcmask 654848  }
  0x3f   : > { %307 = vst [vmem:[#allocation2 + $0x60] sm:$0xff] %v1979_v0  ;;  %309 = vst [vmem:[#allocation2 + $0x70] sm:$0xff] %v1979_v0  ;;  %s2574_s26 = smov 80   ;;  %vm623_vm5 = vcmask 786048   ;;  %vm652_vm6 = vcmask 917248   ;;  %vm681_vm7 = vcmask 1048448  }
  0x40   : > { %311 = vst [vmem:[#allocation2 + $0x80] sm:$0xff] %v1979_v0  ;;  %313 = vst [vmem:[#allocation2 + $0x90] sm:$0xff] %v1979_v0  ;;  %540 = vrot.lane.b32.xlu1 %v289_v3, %s1981_s27  ;;  %507 = vrot.lane.b32.xlu0 %v289_v3, %s1982_s8  ;;  %s271_s7 = scalar_select %p270_p8, %s1966_s18, 1  ;;  %vm909_vm8 = vcmask 1043456   ;;  %vm905_vm9 = vcmask 31744  }
  0x41   : > { %315 = vst [vmem:[#allocation2 + $0xa0] sm:$0xff] %v1979_v0  ;;  %317 = vst [vmem:[#allocation2 + $0xb0] sm:$0xff] %v1979_v0  ;;  %s1432_s25 = scalar_lea.sflag [#allocation6], %s2126_s22  ;;  %p2575_p11 = scmp.ne.s32.totalorder %s2570_s28, 0 }
  0x42   : > { %319 = vst [vmem:[#allocation2 + $0xc0] sm:$0xff] %v1979_v0  ;;  %321 = vst [vmem:[#allocation2 + $0xd0] sm:$0xff] %v1979_v0  ;;  %s1585_s9 = sshll.u32 %s271_s7, 3  ;;  %s1586_s7 = sshll.u32 %s1966_s18, 8 }
  0x43   : > { %323 = vst [vmem:[#allocation2 + $0xe0] sm:$0xff] %v1979_v0  ;;  %325 = vst [vmem:[#allocation2 + $0xf0] sm:$0xff] %v1979_v0  ;;  %s277_s21 = scalar_lea.vmem %s2560_s0, %s1585_s9  ;;  %s2511_s24 = scalar_lea.hbm %s2564_s4, %s1586_s7 }
  0x44   : > { %328 = vst [vmem:[#allocation2 + $0x108] sm:$0xff] %v1979_v0  ;;  %330 = vst [vmem:[#allocation2 + $0x118] sm:$0xff] %v1979_v0  ;;  %569 = vrot.lane.b32.xlu1 %v289_v3, %s1983_s11  ;;  %567 = vrot.lane.b32.xlu0 %v288_v2, %s1983_s11  ;;  %v2264_v7 = vld [vmem:[%s277_s21] sm:$0xff] }
  0x45   : > { %332 = vst [vmem:[#allocation2 + $0x128] sm:$0xff] %v1979_v0  ;;  %334 = vst [vmem:[#allocation2 + $0x138] sm:$0xff] %v1979_v0  ;;  %v2270_v9 = vcombine.high %v2264_v7, %v2264_v7 }
  0x46   : > { %338 = vst [vmem:[#allocation2 + $0x158] sm:$0xff] %v1979_v0  ;;  %340 = vst [vmem:[#allocation2 + $0x168] sm:$0xff] %v1979_v0 }
  0x47   : > { %342 = vst [vmem:[#allocation2 + $0x178] sm:$0xff] %v1979_v0  ;;  %344 = vst [vmem:[#allocation2 + $0x188] sm:$0xff] %v1979_v0  ;;  %897 = vmatprep.mubr.f32.mxu0 %v2270_v9 }
  0x48   : > { %346 = vst [vmem:[#allocation2 + $0x198] sm:$0xff] %v1979_v0  ;;  %348 = vst [vmem:[#allocation2 + $0x1a8] sm:$0xff] %v1979_v0  ;;  %598 = vrot.lane.b32.xlu1 %v289_v3, %s1984_s13  ;;  %596 = vrot.lane.b32.xlu0 %v288_v2, %s1984_s13 }
  0x49   : > { %350 = vst [vmem:[#allocation2 + $0x1b8] sm:$0xff] %v1979_v0  ;;  %352 = vst [vmem:[#allocation2 + $0x1c8] sm:$0xff] %v1979_v0 }
  0x4a   : > { %354 = vst [vmem:[#allocation2 + $0x1d8] sm:$0xff] %v1979_v0  ;;  %356 = vst [vmem:[#allocation2 + $0x1e8] sm:$0xff] %v1979_v0 }
  0x4b   : > { %358 = vst [vmem:[#allocation2 + $0x1f8] sm:$0xff] %v1979_v0  ;;  %359 = vst [vmem:[#allocation2 + $0x200] sm:$0xff] %v1979_v0 }
  0x4c   : > { %361 = vst [vmem:[#allocation2 + $0x210] sm:$0xff] %v1979_v0  ;;  %363 = vst [vmem:[#allocation2 + $0x220] sm:$0xff] %v1979_v0  ;;  %627 = vrot.lane.b32.xlu1 %v289_v3, %s2566_s14  ;;  %625 = vrot.lane.b32.xlu0 %v288_v2, %s2566_s14  ;;  %s282_s14 = scalar_lea.vmem %s2563_s3, %s1585_s9 }
  0x4d   : > { %365 = vst [vmem:[#allocation2 + $0x230] sm:$0xff] %v1979_v0  ;;  %367 = vst [vmem:[#allocation2 + $0x240] sm:$0xff] %v1979_v0  ;;  %v2266_v8 = vld [vmem:[%s282_s14] sm:$0xff] }
  0x4e   : > { %369 = vst [vmem:[#allocation2 + $0x250] sm:$0xff] %v1979_v0  ;;  %371 = vst [vmem:[#allocation2 + $0x260] sm:$0xff] %v1979_v0 }
  0x4f   : > { %373 = vst [vmem:[#allocation2 + $0x270] sm:$0xff] %v1979_v0  ;;  %375 = vst [vmem:[#allocation2 + $0x280] sm:$0xff] %v1979_v0 }
  0x50   : > { %377 = vst [vmem:[#allocation2 + $0x290] sm:$0xff] %v1979_v0  ;;  %379 = vst [vmem:[#allocation2 + $0x2a0] sm:$0xff] %v1979_v0  ;;  %656 = vrot.lane.b32.xlu1 %v289_v3, %s1986_s6  ;;  %654 = vrot.lane.b32.xlu0 %v288_v2, %s1986_s6 }
  0x51   : > { %381 = vst [vmem:[#allocation2 + $0x2b0] sm:$0xff] %v1979_v0  ;;  %383 = vst [vmem:[#allocation2 + $0x2c0] sm:$0xff] %v1979_v0 }
  0x52   : > { %385 = vst [vmem:[#allocation2 + $0x2d0] sm:$0xff] %v1979_v0  ;;  %387 = vst [vmem:[#allocation2 + $0x2e0] sm:$0xff] %v1979_v0 }
  0x53   : > { %389 = vst [vmem:[#allocation2 + $0x2f0] sm:$0xff] %v1979_v0  ;;  %392 = vst [vmem:[#allocation2 + $0x308] sm:$0xff] %v1979_v0 }
  0x54   : > { %394 = vst [vmem:[#allocation2 + $0x318] sm:$0xff] %v1979_v0  ;;  %396 = vst [vmem:[#allocation2 + $0x328] sm:$0xff] %v1979_v0  ;;  %685 = vrot.lane.b32.xlu1 %v289_v3, %s1987_s5  ;;  %683 = vrot.lane.b32.xlu0 %v288_v2, %s1987_s5 }
  0x55   : > { %398 = vst [vmem:[#allocation2 + $0x338] sm:$0xff] %v1979_v0  ;;  %400 = vst [vmem:[#allocation2 + $0x348] sm:$0xff] %v1979_v0 }
  0x56   : > { %402 = vst [vmem:[#allocation2 + $0x358] sm:$0xff] %v1979_v0  ;;  %404 = vst [vmem:[#allocation2 + $0x368] sm:$0xff] %v1979_v0 }
  0x57   : > { %406 = vst [vmem:[#allocation2 + $0x378] sm:$0xff] %v1979_v0  ;;  %408 = vst [vmem:[#allocation2 + $0x388] sm:$0xff] %v1979_v0 }
  0x58   : > { %410 = vst [vmem:[#allocation2 + $0x398] sm:$0xff] %v1979_v0  ;;  %412 = vst [vmem:[#allocation2 + $0x3a8] sm:$0xff] %v1979_v0  ;;  %517 = vrot.lane.b32.xlu1 %v291_v10, %s1982_s8  ;;  %515 = vrot.lane.b32.xlu0 %v290_v11, %s1982_s8 }
  0x59   : > { %414 = vst [vmem:[#allocation2 + $0x3b8] sm:$0xff] %v1979_v0  ;;  %416 = vst [vmem:[#allocation2 + $0x3c8] sm:$0xff] %v1979_v0 }
  0x5a   : > { %418 = vst [vmem:[#allocation2 + $0x3d8] sm:$0xff] %v1979_v0  ;;  %420 = vst [vmem:[#allocation2 + $0x3e8] sm:$0xff] %v1979_v0 }
  0x5b   : > { %422 = vst [vmem:[#allocation2 + $0x3f8] sm:$0xff] %v1979_v0  ;;  %423 = vst [vmem:[#allocation2 + $0x400] sm:$0xff] %v1979_v0 }
  0x5c   : > { %425 = vst [vmem:[#allocation2 + $0x410] sm:$0xff] %v1979_v0  ;;  %427 = vst [vmem:[#allocation2 + $0x420] sm:$0xff] %v1979_v0  ;;  %548 = vrot.lane.b32.xlu1 %v291_v10, %s1981_s27  ;;  %546 = vrot.lane.b32.xlu0 %v290_v11, %s1981_s27 }
  0x5d   : > { %429 = vst [vmem:[#allocation2 + $0x430] sm:$0xff] %v1979_v0  ;;  %431 = vst [vmem:[#allocation2 + $0x440] sm:$0xff] %v1979_v0 }
  0x5e   : > { %433 = vst [vmem:[#allocation2 + $0x450] sm:$0xff] %v1979_v0  ;;  %435 = vst [vmem:[#allocation2 + $0x460] sm:$0xff] %v1979_v0 }
  0x5f   : > { %437 = vst [vmem:[#allocation2 + $0x470] sm:$0xff] %v1979_v0  ;;  %439 = vst [vmem:[#allocation2 + $0x480] sm:$0xff] %v1979_v0 }
  0x60   : > { %441 = vst [vmem:[#allocation2 + $0x490] sm:$0xff] %v1979_v0  ;;  %443 = vst [vmem:[#allocation2 + $0x4a0] sm:$0xff] %v1979_v0  ;;  %527 = vrot.lane.b32.xlu1 %v293_v12, %s1982_s8  ;;  %525 = vrot.lane.b32.xlu0 %v292_v13, %s1982_s8 }
  0x61   : > { %445 = vst [vmem:[#allocation2 + $0x4b0] sm:$0xff] %v1979_v0  ;;  %447 = vst [vmem:[#allocation2 + $0x4c0] sm:$0xff] %v1979_v0 }
  0x62   : > { %449 = vst [vmem:[#allocation2 + $0x4d0] sm:$0xff] %v1979_v0  ;;  %451 = vst [vmem:[#allocation2 + $0x4e0] sm:$0xff] %v1979_v0 }
  0x63   : > { %453 = vst [vmem:[#allocation2 + $0x4f0] sm:$0xff] %v1979_v0  ;;  %456 = vst [vmem:[#allocation2 + $0x508] sm:$0xff] %v1979_v0 }
  0x64   : > { %458 = vst [vmem:[#allocation2 + $0x518] sm:$0xff] %v1979_v0  ;;  %460 = vst [vmem:[#allocation2 + $0x528] sm:$0xff] %v1979_v0  ;;  %577 = vrot.lane.b32.xlu1 %v291_v10, %s1983_s11  ;;  %575 = vrot.lane.b32.xlu0 %v290_v11, %s1983_s11 }
  0x65   : > { %462 = vst [vmem:[#allocation2 + $0x538] sm:$0xff] %v1979_v0  ;;  %464 = vst [vmem:[#allocation2 + $0x548] sm:$0xff] %v1979_v0 }
  0x66   : > { %466 = vst [vmem:[#allocation2 + $0x558] sm:$0xff] %v1979_v0  ;;  %468 = vst [vmem:[#allocation2 + $0x568] sm:$0xff] %v1979_v0 }
  0x67   : > { %470 = vst [vmem:[#allocation2 + $0x578] sm:$0xff] %v1979_v0  ;;  %472 = vst [vmem:[#allocation2 + $0x588] sm:$0xff] %v1979_v0 }
  0x68   : > { %474 = vst [vmem:[#allocation2 + $0x598] sm:$0xff] %v1979_v0  ;;  %476 = vst [vmem:[#allocation2 + $0x5a8] sm:$0xff] %v1979_v0  ;;  %556 = vrot.lane.b32.xlu1 %v293_v12, %s1981_s27  ;;  %554 = vrot.lane.b32.xlu0 %v292_v13, %s1981_s27 }
  0x69   : > { %478 = vst [vmem:[#allocation2 + $0x5b8] sm:$0xff] %v1979_v0  ;;  %480 = vst [vmem:[#allocation2 + $0x5c8] sm:$0xff] %v1979_v0 }
  0x6a   : > { %482 = vst [vmem:[#allocation2 + $0x5d8] sm:$0xff] %v1979_v0  ;;  %484 = vst [vmem:[#allocation2 + $0x5e8] sm:$0xff] %v1979_v0 }
  0x6b   : > { %486 = vst [vmem:[#allocation2 + $0x5f8] sm:$0xff] %v1979_v0  ;;  %489 = vst.msk [vmem:[#allocation2] sm:$0xff] %vm487_vm0, %v288_v2 }
  0x6c   : > { %490 = vst.msk [vmem:[#allocation2 + $0x10] sm:$0xff] %vm487_vm0, %v289_v3  ;;  %708 = vst.msk [vmem:[#allocation2 + $0x108] sm:$0xff] %vm487_vm0, %v288_v2  ;;  %606 = vrot.lane.b32.xlu1 %v291_v10, %s1984_s13  ;;  %604 = vrot.lane.b32.xlu0 %v290_v11, %s1984_s13 }
  0x6d   : > { %709 = vst.msk [vmem:[#allocation2 + $0x118] sm:$0xff] %vm487_vm0, %v289_v3  ;;  %488 = vst.msk [vmem:[#allocation3] sm:$0xff] %vm487_vm0, %v2266_v8 }
  0x6e   : > { %707 = vst.msk [vmem:[#allocation3 + $0x8] sm:$0xff] %vm487_vm0, %v2266_v8  ;;  %493 = vst.msk [vmem:[#allocation2 + $0x210] sm:$0xff] %vm487_vm0, %v291_v10 }
  0x6f   : > { %711 = vst.msk [vmem:[#allocation2 + $0x318] sm:$0xff] %vm487_vm0, %v291_v10  ;;  %492 = vst.msk [vmem:[#allocation2 + $0x200] sm:$0xff] %vm487_vm0, %v290_v11 }
  0x70   : > { %710 = vst.msk [vmem:[#allocation2 + $0x308] sm:$0xff] %vm487_vm0, %v290_v11  ;;  %496 = vst.msk [vmem:[#allocation2 + $0x410] sm:$0xff] %vm487_vm0, %v293_v12  ;;  %585 = vrot.lane.b32.xlu1 %v293_v12, %s1983_s11  ;;  %583 = vrot.lane.b32.xlu0 %v292_v13, %s1983_s11 }
  0x71   : > { %713 = vst.msk [vmem:[#allocation2 + $0x518] sm:$0xff] %vm487_vm0, %v293_v12  ;;  %495 = vst.msk [vmem:[#allocation2 + $0x400] sm:$0xff] %vm487_vm0, %v292_v13 }
  0x72   : > { %v766_v4 = vld [vmem:[#allocation2] sm:$0xff]  ;;  %712 = vst.msk [vmem:[#allocation2 + $0x508] sm:$0xff] %vm487_vm0, %v292_v13 }
  0x73   : > { %v768_v5 = vld [vmem:[#allocation2 + $0x10] sm:$0xff]  ;;  %v799_v48 = vld [vmem:[#allocation2 + $0x108] sm:$0xff] }
  0x74   : > { %v1589_v6 = vpack.c.bf16 %v768_v5, %v766_v4  ;;  %635 = vrot.lane.b32.xlu1 %v291_v10, %s2574_s26  ;;  %633 = vrot.lane.b32.xlu0 %v290_v11, %s2574_s26  ;;  %v801_v49 = vld [vmem:[#allocation2 + $0x118] sm:$0xff] }
  0x75   : > { %v1619_v51 = vpack.c.bf16 %v801_v49, %v799_v48 }
  0x76   : > { %1590 = vmatpush1.bf16.msra.mxu0 %v1589_v6 }
  0x77   : > { %1592 = vmatprep.subr.bf16.mxu0 %v1980_v1 }
  0x78   : > { %614 = vrot.lane.b32.xlu1 %v293_v12, %s1984_s13  ;;  %612 = vrot.lane.b32.xlu0 %v292_v13, %s1984_s13 }
  0x7c   : > { %664 = vrot.lane.b32.xlu1 %v291_v10, %s1986_s6  ;;  %662 = vrot.lane.b32.xlu0 %v290_v11, %s1986_s6 }
  0x80   : > { %643 = vrot.lane.b32.xlu1 %v293_v12, %s2574_s26  ;;  %641 = vrot.lane.b32.xlu0 %v292_v13, %s2574_s26 }
  0x84   : > { %693 = vrot.lane.b32.xlu1 %v291_v10, %s1987_s5  ;;  %691 = vrot.lane.b32.xlu0 %v290_v11, %s1987_s5 }
  0x88   : > { %672 = vrot.lane.b32.xlu1 %v293_v12, %s1986_s6  ;;  %670 = vrot.lane.b32.xlu0 %v292_v13, %s1986_s6 }
  0x8c   : > { %701 = vrot.lane.b32.xlu1 %v293_v12, %s1987_s5  ;;  %699 = vrot.lane.b32.xlu0 %v292_v13, %s1987_s5 }
  0x90   : > { %498 = vrot.lane.b32.xlu0 %v2266_v8, %s1982_s8  ;;  %533 = vrot.lane.b32.xlu1 %v2266_v8, %s1981_s27 }
  0x94   : > { %562 = vrot.lane.b32.xlu0 %v2266_v8, %s1983_s11  ;;  %591 = vrot.lane.b32.xlu1 %v2266_v8, %s1984_s13 }
  0x98   : > { %620 = vrot.lane.b32.xlu0 %v2266_v8, %s2574_s26  ;;  %649 = vrot.lane.b32.xlu1 %v2266_v8, %s1986_s6  ;;  %s1988_s26 = smov [#allocation7]  }
  0x99   : > { %s1896_s27 = sshll.u32 %s1988_s26, 4  ;;  %s1897_s27 = int_to_ptr.vmem [resolvable:$false] %s1896_s27 }
  0x9a   : > { %s1898_s8 = scalar_lea.vmem %s1897_s27, 512 }
  0x9c   : > { %678 = vrot.lane.b32.xlu0 %v2266_v8, %s1987_s5  ;;  %s1565_s5 = sshll.u32 %s2126_s22, 4 }
  0x9d   : > { %s268_s9 = scalar_lea.vmem [#allocation7], %s1565_s5 }
  0x9e   : > { %s1448_s10 = sshll.u32 %s268_s9, 4  ;;  %s2513_s10 = int_to_ptr.vmem [resolvable:$true] %s1448_s10 }
  0x9f   : > { %s1892_s18 = scalar_lea.vmem %s2513_s10, 256  ;;  %p1899_p13 = scmp.lt.s32.totalorder %s2513_s10, %s1897_s27 }
  0xa0   : > { %p1893_p9 = scmp.ne.s32.totalorder %s2513_s10, %s1892_s18  ;;  %p1900_p2 = scmp.lt.s32.totalorder %s1898_s8, %s1892_s18 }
  0xa2   : > { %p1894_p0 = pnand %p1893_p9, %p2575_p11  ;;  %p1901_p4 = por %p1900_p2, %p1899_p13 }
  0xa4   : > { %p1895_p5 = pneg %p1894_p0 }
  0xa6   : > { %p1902_p6 = pnand %p1901_p4, %p1895_p5 }
  0xae   : > { %v539_v14 = vpop.permute.xlu1 %538  ;;  %v506_v15 = vpop.permute.xlu0 %505 }
  0xaf   : > { %544 = vst.msk [vmem:[#allocation2 + $0x40] sm:$0xff] %vm536_vm1, %v539_v14  ;;  %722 = vst.msk [vmem:[#allocation2 + $0x148] sm:$0xff] %vm536_vm1, %v539_v14 }
  0xb0   : > { %511 = vst.msk [vmem:[#allocation2 + $0x20] sm:$0xff] %vm501_vm2, %v506_v15  ;;  %715 = vst.msk [vmem:[#allocation2 + $0x128] sm:$0xff] %vm501_vm2, %v506_v15 }
  0xb2   : > { %v541_v16 = vpop.permute.xlu1 %540  ;;  %v508_v17 = vpop.permute.xlu0 %507 }
  0xb3   : > { %545 = vst.msk [vmem:[#allocation2 + $0x50] sm:$0xff] %vm536_vm1, %v541_v16  ;;  %723 = vst.msk [vmem:[#allocation2 + $0x158] sm:$0xff] %vm536_vm1, %v541_v16  ;;  %v1210_v16 = vld [vmem:[#allocation2 + $0x400] sm:$0xff] }
  0xb4   : > { %512 = vst.msk [vmem:[#allocation2 + $0x30] sm:$0xff] %vm501_vm2, %v508_v17  ;;  %716 = vst.msk [vmem:[#allocation2 + $0x138] sm:$0xff] %vm501_vm2, %v508_v17  ;;  %v1212_v17 = vld [vmem:[#allocation2 + $0x410] sm:$0xff] }
  0xb6   : > { %v570_v18 = vpop.permute.xlu1 %569  ;;  %v568_v19 = vpop.permute.xlu0 %567  ;;  %v774_v25 = vld [vmem:[#allocation2 + $0x40] sm:$0xff]  ;;  %v807_v55 = vld [vmem:[#allocation2 + $0x148] sm:$0xff] }
  0xb7   : > { %574 = vst.msk [vmem:[#allocation2 + $0x70] sm:$0xff] %vm565_vm3, %v570_v18  ;;  %730 = vst.msk [vmem:[#allocation2 + $0x178] sm:$0xff] %vm565_vm3, %v570_v18  ;;  %v770_v20 = vld [vmem:[#allocation2 + $0x20] sm:$0xff]  ;;  %v803_v53 = vld [vmem:[#allocation2 + $0x128] sm:$0xff] }
  0xb8   : > { %573 = vst.msk [vmem:[#allocation2 + $0x60] sm:$0xff] %vm565_vm3, %v568_v19  ;;  %729 = vst.msk [vmem:[#allocation2 + $0x168] sm:$0xff] %vm565_vm3, %v568_v19 }
  0xba   : > { %v599_v22 = vpop.permute.xlu1 %598  ;;  %v597_v23 = vpop.permute.xlu0 %596  ;;  %v776_v26 = vld [vmem:[#allocation2 + $0x50] sm:$0xff]  ;;  %v809_v56 = vld [vmem:[#allocation2 + $0x158] sm:$0xff] }
  0xbb   : > { %v772_v21 = vld [vmem:[#allocation2 + $0x30] sm:$0xff]  ;;  %603 = vst.msk [vmem:[#allocation2 + $0x90] sm:$0xff] %vm594_vm4, %v599_v22  ;;  %737 = vst.msk [vmem:[#allocation2 + $0x198] sm:$0xff] %vm594_vm4, %v599_v22  ;;  %v1597_v31 = vpack.c.bf16 %v776_v26, %v774_v25  ;;  %v805_v52 = vld [vmem:[#allocation2 + $0x138] sm:$0xff]  ;;  %v1627_v57 = vpack.c.bf16 %v809_v56, %v807_v55 }
  0xbc   : > { %v1593_v24 = vpack.c.bf16 %v772_v21, %v770_v20  ;;  %602 = vst.msk [vmem:[#allocation2 + $0x80] sm:$0xff] %vm594_vm4, %v597_v23  ;;  %736 = vst.msk [vmem:[#allocation2 + $0x188] sm:$0xff] %vm594_vm4, %v597_v23  ;;  %v1623_v54 = vpack.c.bf16 %v805_v52, %v803_v53  ;;  %v1717_v20 = vpack.c.bf16 %v1212_v17, %v1210_v16 }
  0xbe   : > { %1594 = vmatpush1.bf16.msra.mxu0 %v1593_v24  ;;  %v628_v27 = vpop.permute.xlu1 %627  ;;  %v626_v28 = vpop.permute.xlu0 %625  ;;  %v780_v30 = vld [vmem:[#allocation2 + $0x70] sm:$0xff]  ;;  %v813_v59 = vld [vmem:[#allocation2 + $0x178] sm:$0xff] }
  0xbf   : > { %1596 = vmatprep.subr.bf16.mxu0 %v1980_v1  ;;  %v778_v29 = vld [vmem:[#allocation2 + $0x60] sm:$0xff]  ;;  %632 = vst.msk [vmem:[#allocation2 + $0xb0] sm:$0xff] %vm623_vm5, %v628_v27  ;;  %744 = vst.msk [vmem:[#allocation2 + $0x1b8] sm:$0xff] %vm623_vm5, %v628_v27  ;;  %v811_v58 = vld [vmem:[#allocation2 + $0x168] sm:$0xff] }
  0xc0   : > { %631 = vst.msk [vmem:[#allocation2 + $0xa0] sm:$0xff] %vm623_vm5, %v626_v28  ;;  %743 = vst.msk [vmem:[#allocation2 + $0x1a8] sm:$0xff] %vm623_vm5, %v626_v28  ;;  %v1601_v32 = vpack.c.bf16 %v780_v30, %v778_v29  ;;  %v1631_v60 = vpack.c.bf16 %v813_v59, %v811_v58 }
  0xc2   : > { %1598 = vmatpush1.bf16.msra.mxu0 %v1597_v31  ;;  %v657_v33 = vpop.permute.xlu1 %656  ;;  %v655_v34 = vpop.permute.xlu0 %654  ;;  %v784_v36 = vld [vmem:[#allocation2 + $0x90] sm:$0xff]  ;;  %v817_v62 = vld [vmem:[#allocation2 + $0x198] sm:$0xff] }
  0xc3   : > { %1600 = vmatprep.subr.bf16.mxu0 %v1980_v1  ;;  %v782_v35 = vld [vmem:[#allocation2 + $0x80] sm:$0xff]  ;;  %661 = vst.msk [vmem:[#allocation2 + $0xd0] sm:$0xff] %vm652_vm6, %v657_v33  ;;  %751 = vst.msk [vmem:[#allocation2 + $0x1d8] sm:$0xff] %vm652_vm6, %v657_v33  ;;  %v815_v61 = vld [vmem:[#allocation2 + $0x188] sm:$0xff] }
  0xc4   : > { %660 = vst.msk [vmem:[#allocation2 + $0xc0] sm:$0xff] %vm652_vm6, %v655_v34  ;;  %750 = vst.msk [vmem:[#allocation2 + $0x1c8] sm:$0xff] %vm652_vm6, %v655_v34  ;;  %v1605_v37 = vpack.c.bf16 %v784_v36, %v782_v35  ;;  %v1635_v63 = vpack.c.bf16 %v817_v62, %v815_v61  ;;  %v1243_v61 = vld [vmem:[#allocation2 + $0x508] sm:$0xff]  ;;  %v1245_v62 = vld [vmem:[#allocation2 + $0x518] sm:$0xff] }
  0xc6   : > { %1602 = vmatpush1.bf16.msra.mxu0 %v1601_v32  ;;  %v686_v38 = vpop.permute.xlu1 %685  ;;  %v684_v39 = vpop.permute.xlu0 %683  ;;  %v788_v41 = vld [vmem:[#allocation2 + $0xb0] sm:$0xff]  ;;  %v821_v2 = vld [vmem:[#allocation2 + $0x1b8] sm:$0xff] }
  0xc7   : > { %1604 = vmatprep.subr.bf16.mxu0 %v1980_v1  ;;  %v786_v40 = vld [vmem:[#allocation2 + $0xa0] sm:$0xff]  ;;  %690 = vst.msk [vmem:[#allocation2 + $0xf0] sm:$0xff] %vm681_vm7, %v686_v38  ;;  %758 = vst.msk [vmem:[#allocation2 + $0x1f8] sm:$0xff] %vm681_vm7, %v686_v38  ;;  %v819_v0 = vld [vmem:[#allocation2 + $0x1a8] sm:$0xff] }
  0xc8   : > { %689 = vst.msk [vmem:[#allocation2 + $0xe0] sm:$0xff] %vm681_vm7, %v684_v39  ;;  %757 = vst.msk [vmem:[#allocation2 + $0x1e8] sm:$0xff] %vm681_vm7, %v684_v39  ;;  %v1609_v42 = vpack.c.bf16 %v788_v41, %v786_v40  ;;  %v1639_v3 = vpack.c.bf16 %v821_v2, %v819_v0  ;;  %v1747_v2 = vpack.c.bf16 %v1245_v62, %v1243_v61 }
  0xca   : > { %1606 = vmatpush1.bf16.msra.mxu0 %v1605_v37  ;;  %v792_v44 = vld [vmem:[#allocation2 + $0xd0] sm:$0xff]  ;;  %v825_v5 = vld [vmem:[#allocation2 + $0x1d8] sm:$0xff]  ;;  %v518_v6 = vpop.permute.xlu1 %517  ;;  %v516_v8 = vpop.permute.xlu0 %515 }
  0xcb   : > { %1608 = vmatprep.subr.bf16.mxu0 %v1980_v1  ;;  %v790_v43 = vld [vmem:[#allocation2 + $0xc0] sm:$0xff]  ;;  %v823_v4 = vld [vmem:[#allocation2 + $0x1c8] sm:$0xff]  ;;  %522 = vst.msk [vmem:[#allocation2 + $0x230] sm:$0xff] %vm501_vm2, %v518_v6  ;;  %718 = vst.msk [vmem:[#allocation2 + $0x338] sm:$0xff] %vm501_vm2, %v518_v6 }
  0xcc   : > { %v1613_v45 = vpack.c.bf16 %v792_v44, %v790_v43  ;;  %v1643_v10 = vpack.c.bf16 %v825_v5, %v823_v4  ;;  %521 = vst.msk [vmem:[#allocation2 + $0x220] sm:$0xff] %vm501_vm2, %v516_v8  ;;  %717 = vst.msk [vmem:[#allocation2 + $0x328] sm:$0xff] %vm501_vm2, %v516_v8 }
  0xce   : > { %1610 = vmatpush1.bf16.msra.mxu0 %v1609_v42  ;;  %v796_v47 = vld [vmem:[#allocation2 + $0xf0] sm:$0xff]  ;;  %v829_v12 = vld [vmem:[#allocation2 + $0x1f8] sm:$0xff]  ;;  %v549_v13 = vpop.permute.xlu1 %548  ;;  %v547_v14 = vpop.permute.xlu0 %546 }
  0xcf   : > { %1612 = vmatprep.subr.bf16.mxu0 %v1980_v1  ;;  %v794_v46 = vld [vmem:[#allocation2 + $0xe0] sm:$0xff]  ;;  %v827_v11 = vld [vmem:[#allocation2 + $0x1e8] sm:$0xff]  ;;  %553 = vst.msk [vmem:[#allocation2 + $0x250] sm:$0xff] %vm536_vm1, %v549_v13  ;;  %725 = vst.msk [vmem:[#allocation2 + $0x358] sm:$0xff] %vm536_vm1, %v549_v13 }
  0xd0   : > { %v1617_v50 = vpack.c.bf16 %v796_v47, %v794_v46  ;;  %v1647_v15 = vpack.c.bf16 %v829_v12, %v827_v11  ;;  %552 = vst.msk [vmem:[#allocation2 + $0x240] sm:$0xff] %vm536_vm1, %v547_v14  ;;  %724 = vst.msk [vmem:[#allocation2 + $0x348] sm:$0xff] %vm536_vm1, %v547_v14 }
  0xd2   : > { %1614 = vmatpush1.bf16.msra.mxu0 %v1613_v45  ;;  %v528_v18 = vpop.permute.xlu1 %527  ;;  %v526_v19 = vpop.permute.xlu0 %525 }
  0xd3   : > { %1616 = vmatprep.subr.bf16.mxu0 %v1980_v1  ;;  %532 = vst.msk [vmem:[#allocation2 + $0x430] sm:$0xff] %vm501_vm2, %v528_v18  ;;  %720 = vst.msk [vmem:[#allocation2 + $0x538] sm:$0xff] %vm501_vm2, %v528_v18 }
  0xd4   : > { %531 = vst.msk [vmem:[#allocation2 + $0x420] sm:$0xff] %vm501_vm2, %v526_v19  ;;  %719 = vst.msk [vmem:[#allocation2 + $0x528] sm:$0xff] %vm501_vm2, %v526_v19 }
  0xd6   : > { %1618 = vmatpush1.bf16.msra.mxu0 %v1617_v50  ;;  %v578_v21 = vpop.permute.xlu1 %577  ;;  %v576_v22 = vpop.permute.xlu0 %575  ;;  %v1033_v62 = vld [vmem:[#allocation2 + $0x358] sm:$0xff] }
  0xd7   : > { %1620 = vmatprep.subr.bf16.mxu0 %v1619_v51  ;;  %582 = vst.msk [vmem:[#allocation2 + $0x270] sm:$0xff] %vm565_vm3, %v578_v21  ;;  %732 = vst.msk [vmem:[#allocation2 + $0x378] sm:$0xff] %vm565_vm3, %v578_v21  ;;  %v1031_v61 = vld [vmem:[#allocation2 + $0x348] sm:$0xff] }
  0xd8   : > { %581 = vst.msk [vmem:[#allocation2 + $0x260] sm:$0xff] %vm565_vm3, %v576_v22  ;;  %731 = vst.msk [vmem:[#allocation2 + $0x368] sm:$0xff] %vm565_vm3, %v576_v22 }
  0xda   : > { %1622 = vmatpush1.bf16.msra.mxu0 %v1980_v1  ;;  %v557_v23 = vpop.permute.xlu1 %556  ;;  %v555_v24 = vpop.permute.xlu0 %554  ;;  %v1216_v26 = vld [vmem:[#allocation2 + $0x430] sm:$0xff]  ;;  %v1249_v5 = vld [vmem:[#allocation2 + $0x538] sm:$0xff] }
  0xdb   : > { %1624 = vmatprep.subr.bf16.mxu0 %v1623_v54  ;;  %v1214_v25 = vld [vmem:[#allocation2 + $0x420] sm:$0xff]  ;;  %561 = vst.msk [vmem:[#allocation2 + $0x450] sm:$0xff] %vm536_vm1, %v557_v23  ;;  %727 = vst.msk [vmem:[#allocation2 + $0x558] sm:$0xff] %vm536_vm1, %v557_v23  ;;  %v1247_v4 = vld [vmem:[#allocation2 + $0x528] sm:$0xff] }
  0xdc   : > { %560 = vst.msk [vmem:[#allocation2 + $0x440] sm:$0xff] %vm536_vm1, %v555_v24  ;;  %726 = vst.msk [vmem:[#allocation2 + $0x548] sm:$0xff] %vm536_vm1, %v555_v24  ;;  %v1721_v27 = vpack.c.bf16 %v1216_v26, %v1214_v25  ;;  %v1751_v6 = vpack.c.bf16 %v1249_v5, %v1247_v4 }
  0xde   : > { %1626 = vmatpush1.bf16.msra.mxu0 %v1980_v1  ;;  %v607_v28 = vpop.permute.xlu1 %606  ;;  %v605_v29 = vpop.permute.xlu0 %604 }
  0xdf   : > { %1628 = vmatprep.subr.bf16.mxu0 %v1627_v57  ;;  %611 = vst.msk [vmem:[#allocation2 + $0x290] sm:$0xff] %vm594_vm4, %v607_v28  ;;  %739 = vst.msk [vmem:[#allocation2 + $0x398] sm:$0xff] %vm594_vm4, %v607_v28 }
  0xe0   : > { %610 = vst.msk [vmem:[#allocation2 + $0x280] sm:$0xff] %vm594_vm4, %v605_v29  ;;  %738 = vst.msk [vmem:[#allocation2 + $0x388] sm:$0xff] %vm594_vm4, %v605_v29  ;;  %v990_v29 = vld [vmem:[#allocation2 + $0x200] sm:$0xff] }
  0xe2   : > { %1630 = vmatpush1.bf16.msra.mxu0 %v1980_v1  ;;  %v586_v30 = vpop.permute.xlu1 %585  ;;  %v584_v31 = vpop.permute.xlu0 %583  ;;  %v1220_v33 = vld [vmem:[#allocation2 + $0x450] sm:$0xff] }
  0xe3   : > { %1632 = vmatprep.subr.bf16.mxu0 %v1631_v60  ;;  %v1218_v32 = vld [vmem:[#allocation2 + $0x440] sm:$0xff]  ;;  %590 = vst.msk [vmem:[#allocation2 + $0x470] sm:$0xff] %vm565_vm3, %v586_v30  ;;  %734 = vst.msk [vmem:[#allocation2 + $0x578] sm:$0xff] %vm565_vm3, %v586_v30  ;;  %v1251_v8 = vld [vmem:[#allocation2 + $0x548] sm:$0xff] }
  0xe4   : > { %589 = vst.msk [vmem:[#allocation2 + $0x460] sm:$0xff] %vm565_vm3, %v584_v31  ;;  %733 = vst.msk [vmem:[#allocation2 + $0x568] sm:$0xff] %vm565_vm3, %v584_v31  ;;  %v1725_v34 = vpack.c.bf16 %v1220_v33, %v1218_v32  ;;  %v992_v30 = vld [vmem:[#allocation2 + $0x210] sm:$0xff]  ;;  %v904_v33 = vld [vmem:[%s2561_s1] sm:$0xff] }
  0xe6   : > { %1634 = vmatpush1.bf16.msra.mxu0 %v1980_v1  ;;  %v636_v35 = vpop.permute.xlu1 %635  ;;  %v634_v36 = vpop.permute.xlu0 %633  ;;  %v1041_v5 = vld [vmem:[#allocation2 + $0x398] sm:$0xff] }
  0xe7   : > { %1636 = vmatprep.subr.bf16.mxu0 %v1635_v63  ;;  %640 = vst.msk [vmem:[#allocation2 + $0x2b0] sm:$0xff] %vm623_vm5, %v636_v35  ;;  %746 = vst.msk [vmem:[#allocation2 + $0x3b8] sm:$0xff] %vm623_vm5, %v636_v35  ;;  %v994_v35 = vld [vmem:[#allocation2 + $0x220] sm:$0xff]  ;;  %v1039_v4 = vld [vmem:[#allocation2 + $0x388] sm:$0xff] }
  0xe8   : > { %639 = vst.msk [vmem:[#allocation2 + $0x2a0] sm:$0xff] %vm623_vm5, %v634_v36  ;;  %745 = vst.msk [vmem:[#allocation2 + $0x3a8] sm:$0xff] %vm623_vm5, %v634_v36  ;;  %v996_v36 = vld [vmem:[#allocation2 + $0x230] sm:$0xff] }
  0xea   : > { %1638 = vmatpush1.bf16.msra.mxu0 %v1980_v1  ;;  %v615_v37 = vpop.permute.xlu1 %614  ;;  %v613_v38 = vpop.permute.xlu0 %612  ;;  %v1224_v40 = vld [vmem:[#allocation2 + $0x470] sm:$0xff]  ;;  %v1257_v13 = vld [vmem:[#allocation2 + $0x578] sm:$0xff] }
  0xeb   : > { %1640 = vmatprep.subr.bf16.mxu0 %v1639_v3  ;;  %v1222_v39 = vld [vmem:[#allocation2 + $0x460] sm:$0xff]  ;;  %619 = vst.msk [vmem:[#allocation2 + $0x490] sm:$0xff] %vm594_vm4, %v615_v37  ;;  %741 = vst.msk [vmem:[#allocation2 + $0x598] sm:$0xff] %vm594_vm4, %v615_v37  ;;  %v1255_v12 = vld [vmem:[#allocation2 + $0x568] sm:$0xff]  ;;  %v1657_v37 = vpack.c.bf16 %v996_v36, %v994_v35 }
  0xec   : > { %618 = vst.msk [vmem:[#allocation2 + $0x480] sm:$0xff] %vm594_vm4, %v613_v38  ;;  %740 = vst.msk [vmem:[#allocation2 + $0x588] sm:$0xff] %vm594_vm4, %v613_v38  ;;  %v1729_v41 = vpack.c.bf16 %v1224_v40, %v1222_v39  ;;  %v1759_v14 = vpack.c.bf16 %v1257_v13, %v1255_v12  ;;  %v998_v38 = vld [vmem:[#allocation2 + $0x240] sm:$0xff]  ;;  %v1000_v39 = vld [vmem:[#allocation2 + $0x250] sm:$0xff] }
  0xed   : > { %v1661_v40 = vpack.c.bf16 %v1000_v39, %v998_v38 }
  0xee   : > { %1642 = vmatpush1.bf16.msra.mxu0 %v1980_v1  ;;  %v665_v42 = vpop.permute.xlu1 %664  ;;  %v663_v43 = vpop.permute.xlu0 %662 }
  0xef   : > { %1644 = vmatprep.subr.bf16.mxu0 %v1643_v10  ;;  %669 = vst.msk [vmem:[#allocation2 + $0x2d0] sm:$0xff] %vm652_vm6, %v665_v42  ;;  %753 = vst.msk [vmem:[#allocation2 + $0x3d8] sm:$0xff] %vm652_vm6, %v665_v42  ;;  %v1253_v10 = vld [vmem:[#allocation2 + $0x558] sm:$0xff]  ;;  %v1004_v42 = vld [vmem:[#allocation2 + $0x270] sm:$0xff] }
  0xf0   : > { %668 = vst.msk [vmem:[#allocation2 + $0x2c0] sm:$0xff] %vm652_vm6, %v663_v43  ;;  %752 = vst.msk [vmem:[#allocation2 + $0x3c8] sm:$0xff] %vm652_vm6, %v663_v43  ;;  %v1755_v11 = vpack.c.bf16 %v1253_v10, %v1251_v8  ;;  %v1043_v8 = vld [vmem:[#allocation2 + $0x3a8] sm:$0xff] }
  0xf2   : > { %1646 = vmatpush1.bf16.msra.mxu0 %v1980_v1  ;;  %v644_v44 = vpop.permute.xlu1 %643  ;;  %v642_v45 = vpop.permute.xlu0 %641  ;;  %v1228_v47 = vld [vmem:[#allocation2 + $0x490] sm:$0xff]  ;;  %v1261_v16 = vld [vmem:[#allocation2 + $0x598] sm:$0xff] }
  0xf3   : > { %1648 = vmatprep.subr.bf16.mxu0 %v1647_v15  ;;  %v1226_v46 = vld [vmem:[#allocation2 + $0x480] sm:$0xff]  ;;  %648 = vst.msk [vmem:[#allocation2 + $0x4b0] sm:$0xff] %vm623_vm5, %v644_v44  ;;  %748 = vst.msk [vmem:[#allocation2 + $0x5b8] sm:$0xff] %vm623_vm5, %v644_v44  ;;  %v1259_v15 = vld [vmem:[#allocation2 + $0x588] sm:$0xff] }
  0xf4   : > { %647 = vst.msk [vmem:[#allocation2 + $0x4a0] sm:$0xff] %vm623_vm5, %v642_v45  ;;  %747 = vst.msk [vmem:[#allocation2 + $0x5a8] sm:$0xff] %vm623_vm5, %v642_v45  ;;  %v1733_v48 = vpack.c.bf16 %v1228_v47, %v1226_v46  ;;  %v1763_v17 = vpack.c.bf16 %v1261_v16, %v1259_v15  ;;  %v1006_v44 = vld [vmem:[#allocation2 + $0x280] sm:$0xff]  ;;  %v1008_v45 = vld [vmem:[#allocation2 + $0x290] sm:$0xff] }
  0xf5   : > { %v1010_v46 = vld [vmem:[#allocation2 + $0x2a0] sm:$0xff]  ;;  %v1012_v47 = vld [vmem:[#allocation2 + $0x2b0] sm:$0xff] }
  0xf6   : > { %1650 = vmatpush1.bf16.msra.mxu0 %v1980_v1  ;;  %v694_v49 = vpop.permute.xlu1 %693  ;;  %v692_v50 = vpop.permute.xlu0 %691  ;;  %v1049_v12 = vld [vmem:[#allocation2 + $0x3d8] sm:$0xff] }
  0xf7   : > { %1716 = vmatprep.subr.bf16.mxu0 %v1980_v1  ;;  %698 = vst.msk [vmem:[#allocation2 + $0x2f0] sm:$0xff] %vm681_vm7, %v694_v49  ;;  %760 = vst.msk [vmem:[#allocation2 + $0x3f8] sm:$0xff] %vm681_vm7, %v694_v49  ;;  %v1014_v49 = vld [vmem:[#allocation2 + $0x2c0] sm:$0xff] }
  0xf8   : > { %697 = vst.msk [vmem:[#allocation2 + $0x2e0] sm:$0xff] %vm681_vm7, %v692_v50  ;;  %759 = vst.msk [vmem:[#allocation2 + $0x3e8] sm:$0xff] %vm681_vm7, %v692_v50  ;;  %v1016_v50 = vld [vmem:[#allocation2 + $0x2d0] sm:$0xff] }
  0xf9   : > { %898 = vmatmul.mubr.f32.vlgmr.msra.gmra.mrb[0].mxu0 %v2264_v7 }
  0xfa   : > { %1718 = vmatpush1.bf16.msra.mxu0 %v1717_v20  ;;  %1338 = vmatprep.mubr.f32.mxu0 %v2270_v9  ;;  %v673_v51 = vpop.permute.xlu1 %672  ;;  %v671_v52 = vpop.permute.xlu0 %670  ;;  %v1232_v54 = vld [vmem:[#allocation2 + $0x4b0] sm:$0xff]  ;;  %v1265_v19 = vld [vmem:[#allocation2 + $0x5b8] sm:$0xff] }
  0xfb   : > { %1720 = vmatprep.subr.bf16.mxu0 %v1980_v1  ;;  %v1230_v53 = vld [vmem:[#allocation2 + $0x4a0] sm:$0xff]  ;;  %677 = vst.msk [vmem:[#allocation2 + $0x4d0] sm:$0xff] %vm652_vm6, %v673_v51  ;;  %755 = vst.msk [vmem:[#allocation2 + $0x5d8] sm:$0xff] %vm652_vm6, %v673_v51  ;;  %v1263_v18 = vld [vmem:[#allocation2 + $0x5a8] sm:$0xff] }
  0xfc   : > { %676 = vst.msk [vmem:[#allocation2 + $0x4c0] sm:$0xff] %vm652_vm6, %v671_v52  ;;  %754 = vst.msk [vmem:[#allocation2 + $0x5c8] sm:$0xff] %vm652_vm6, %v671_v52  ;;  %v1737_v55 = vpack.c.bf16 %v1232_v54, %v1230_v53  ;;  %v1767_v20 = vpack.c.bf16 %v1265_v19, %v1263_v18  ;;  %v1677_v53 = vpack.c.bf16 %v1016_v50, %v1014_v49  ;;  %v1023_v54 = vld [vmem:[#allocation2 + $0x308] sm:$0xff] }
  0xfe   : > { %1722 = vmatpush1.bf16.msra.mxu0 %v1721_v27  ;;  %v702_v56 = vpop.permute.xlu1 %701  ;;  %v700_v57 = vpop.permute.xlu0 %699  ;;  %v2446_v27 = vld [vmem:[#allocation2 + $0x8] sm:$0xff]  ;;  %v1020_v52 = vld [vmem:[#allocation2 + $0x2f0] sm:$0xff]  ;;  %v1053_v15 = vld [vmem:[#allocation2 + $0x3f8] sm:$0xff] }
  0xff   : > { %1724 = vmatprep.subr.bf16.mxu0 %v1980_v1  ;;  %706 = vst.msk [vmem:[#allocation2 + $0x4f0] sm:$0xff] %vm681_vm7, %v702_v56  ;;  %762 = vst.msk [vmem:[#allocation2 + $0x5f8] sm:$0xff] %vm681_vm7, %v702_v56  ;;  %v2450_v28 = vpack.c.bf16 %v2446_v27, %v2446_v27  ;;  %v1018_v51 = vld [vmem:[#allocation2 + $0x2e0] sm:$0xff] }
 0x100   : > { %705 = vst.msk [vmem:[#allocation2 + $0x4e0] sm:$0xff] %vm681_vm7, %v700_v57  ;;  %761 = vst.msk [vmem:[#allocation2 + $0x5e8] sm:$0xff] %vm681_vm7, %v700_v57  ;;  %v1681_v56 = vpack.c.bf16 %v1020_v52, %v1018_v51 }
 0x102   : > { %1726 = vmatpush1.bf16.msra.mxu0 %v1725_v34  ;;  %v1236_v59 = vld [vmem:[#allocation2 + $0x4d0] sm:$0xff]  ;;  %v1269_v22 = vld [vmem:[#allocation2 + $0x5d8] sm:$0xff]  ;;  %v1653_v34 = vpack.c.bf16 %v992_v30, %v990_v29  ;;  %v499_v19 = vpop.permute.xlu0 %498 }
 0x103   : > { %1728 = vmatprep.subr.bf16.mxu0 %v1980_v1  ;;  %v1234_v58 = vld [vmem:[#allocation2 + $0x4c0] sm:$0xff]  ;;  %v1267_v21 = vld [vmem:[#allocation2 + $0x5c8] sm:$0xff]  ;;  %502 = vst.msk [vmem:[#allocation3] sm:$0xff] %vm501_vm2, %v499_v19  ;;  %714 = vst.msk [vmem:[#allocation3 + $0x8] sm:$0xff] %vm501_vm2, %v499_v19 }
 0x104   : > { %v1741_v60 = vpack.c.bf16 %v1236_v59, %v1234_v58  ;;  %v1771_v23 = vpack.c.bf16 %v1269_v22, %v1267_v21  ;;  %v1027_v58 = vld [vmem:[#allocation2 + $0x328] sm:$0xff]  ;;  %v1029_v59 = vld [vmem:[#allocation2 + $0x338] sm:$0xff]  ;;  %v1576_v29 = vld [vmem:[%s2561_s1 + $0x10] sm:$0xff] }
 0x106   : > { %1730 = vmatpush1.bf16.msra.mxu0 %v1729_v41  ;;  %v1240_v0 = vld [vmem:[#allocation2 + $0x4f0] sm:$0xff]  ;;  %v1273_v25 = vld [vmem:[#allocation2 + $0x5f8] sm:$0xff]  ;;  %v1002_v41 = vld [vmem:[#allocation2 + $0x260] sm:$0xff]  ;;  %v563_v21 = vpop.permute.xlu0 %562 }
 0x107   : > { %1732 = vmatprep.subr.bf16.mxu0 %v1980_v1  ;;  %v1238_v63 = vld [vmem:[#allocation2 + $0x4e0] sm:$0xff]  ;;  %v1271_v24 = vld [vmem:[#allocation2 + $0x5e8] sm:$0xff]  ;;  %v1665_v43 = vpack.c.bf16 %v1004_v42, %v1002_v41 }
 0x108   : > { %v1745_v3 = vpack.c.bf16 %v1240_v0, %v1238_v63  ;;  %v1775_v26 = vpack.c.bf16 %v1273_v25, %v1271_v24  ;;  %v1691_v63 = vpack.c.bf16 %v1033_v62, %v1031_v61  ;;  %v1035_v0 = vld [vmem:[#allocation2 + $0x368] sm:$0xff] }
 0x10a   : > { %1734 = vmatpush1.bf16.msra.mxu0 %v1733_v48  ;;  %v1673_v48 = vpack.c.bf16 %v1012_v47, %v1010_v46 }
 0x10b   : > { %1736 = vmatprep.subr.bf16.mxu0 %v1980_v1 }
 0x10e   : > { %1738 = vmatpush1.bf16.msra.mxu0 %v1737_v55  ;;  %v1025_v55 = vld [vmem:[#allocation2 + $0x318] sm:$0xff] }
 0x10f   : > { %1740 = vmatprep.subr.bf16.mxu0 %v1980_v1  ;;  %v1683_v57 = vpack.c.bf16 %v1025_v55, %v1023_v54 }
 0x112   : > { %1742 = vmatpush1.bf16.msra.mxu0 %v1741_v60  ;;  %v1687_v60 = vpack.c.bf16 %v1029_v59, %v1027_v58 }
 0x113   : > { %1744 = vmatprep.subr.bf16.mxu0 %v1980_v1 }
 0x116   : > { %1746 = vmatpush1.bf16.msra.mxu0 %v1745_v3 }
 0x117   : > { %1748 = vmatprep.subr.bf16.mxu0 %v1747_v2  ;;  %v1037_v2 = vld [vmem:[#allocation2 + $0x378] sm:$0xff] }
 0x118   : > { %v1695_v3 = vpack.c.bf16 %v1037_v2, %v1035_v0 }
 0x11a   : > { %1750 = vmatpush1.bf16.msra.mxu0 %v1980_v1 }
 0x11b   : > { %1752 = vmatprep.subr.bf16.mxu0 %v1751_v6  ;;  %v1699_v6 = vpack.c.bf16 %v1041_v5, %v1039_v4 }
 0x11e   : > { %1754 = vmatpush1.bf16.msra.mxu0 %v1980_v1 }
 0x11f   : > { %1756 = vmatprep.subr.bf16.mxu0 %v1755_v11  ;;  %v1047_v11 = vld [vmem:[#allocation2 + $0x3c8] sm:$0xff] }
 0x120   : > { %v1707_v13 = vpack.c.bf16 %v1049_v12, %v1047_v11 }
 0x122   : > { %1758 = vmatpush1.bf16.msra.mxu0 %v1980_v1 }
 0x123   : > { %1760 = vmatprep.subr.bf16.mxu0 %v1759_v14  ;;  %v1051_v14 = vld [vmem:[#allocation2 + $0x3e8] sm:$0xff] }
 0x124   : > { %v1711_v16 = vpack.c.bf16 %v1053_v15, %v1051_v14 }
 0x126   : > { %1762 = vmatpush1.bf16.msra.mxu0 %v1980_v1 }
 0x127   : > { %1764 = vmatprep.subr.bf16.mxu0 %v1763_v17 }
 0x12a   : > { %1766 = vmatpush1.bf16.msra.mxu0 %v1980_v1 }
 0x12b   : > { %1768 = vmatprep.subr.bf16.mxu0 %v1767_v20  ;;  %v534_v20 = vpop.permute.xlu1 %533 }
 0x12c   : > { %537 = vst.msk [vmem:[#allocation3] sm:$0xff] %vm536_vm1, %v534_v20  ;;  %721 = vst.msk [vmem:[#allocation3 + $0x8] sm:$0xff] %vm536_vm1, %v534_v20 }
 0x12d   : > { %566 = vst.msk [vmem:[#allocation3] sm:$0xff] %vm565_vm3, %v563_v21  ;;  %728 = vst.msk [vmem:[#allocation3 + $0x8] sm:$0xff] %vm565_vm3, %v563_v21 }
 0x12e   : > { %1770 = vmatpush1.bf16.msra.mxu0 %v1980_v1 }
 0x12f   : > { %1772 = vmatprep.subr.bf16.mxu0 %v1771_v23  ;;  %v592_v22 = vpop.permute.xlu1 %591 }
 0x130   : > { %595 = vst.msk [vmem:[#allocation3] sm:$0xff] %vm594_vm4, %v592_v22  ;;  %735 = vst.msk [vmem:[#allocation3 + $0x8] sm:$0xff] %vm594_vm4, %v592_v22 }
 0x132   : > { %1774 = vmatpush1.bf16.msra.mxu0 %v1980_v1 }
 0x133   : > { %1776 = vmatprep.subr.bf16.mxu0 %v1775_v26  ;;  %v650_v23 = vpop.permute.xlu1 %649 }
 0x136   : > { %1778 = vmatpush1.bf16.msra.mxu0 %v2450_v28 }
 0x139   : > { %1339 = vmatmul.mubr.f32.vlgmr.msra.gmra.mrb[2].mxu0 %v2264_v7 }
 0x1cc   : > { %v899_v31 = vpop.f32.mrb[0].mxu0 }
 0x1cd   : > { %v901_v32 = vpop.f32.mrb[1].mxu0 }
 0x1ce   : > { %1569 = vmatprep.subr.msk.mxu1 %vm909_vm8, %v901_v32 }
 0x1cf   : > { %1570 = vmatpush1.msk.msra.mxu1 %vm909_vm8, %v899_v31 }
 0x1d0   : > { %1652 = vmatprep.subr.bf16.mxu1 %v1980_v1  ;;  %1571 = vmatmul.mubr.msk.f32.vlgmr.msra.gmra.mrb[0].mxu1 %vm905_vm9, %v904_v33 }
 0x1d1   : > { %1654 = vmatpush1.bf16.msra.mxu1 %v1653_v34  ;;  %1118 = vmatprep.mubr.f32.mxu1 %v2270_v9  ;;  %v1669_v9 = vpack.c.bf16 %v1008_v45, %v1006_v44 }
 0x1d2   : > { %1656 = vmatprep.subr.bf16.mxu1 %v1980_v1 }
 0x1d5   : > { %1658 = vmatpush1.bf16.msra.mxu1 %v1657_v37 }
 0x1d6   : > { %1660 = vmatprep.subr.bf16.mxu1 %v1980_v1 }
 0x1d9   : > { %1662 = vmatpush1.bf16.msra.mxu1 %v1661_v40 }
 0x1da   : > { %1664 = vmatprep.subr.bf16.mxu1 %v1980_v1 }
 0x1dd   : > { %1666 = vmatpush1.bf16.msra.mxu1 %v1665_v43 }
 0x1de   : > { %1668 = vmatprep.subr.bf16.mxu1 %v1980_v1 }
 0x1e1   : > { %1670 = vmatpush1.bf16.msra.mxu1 %v1669_v9 }
 0x1e2   : > { %1672 = vmatprep.subr.bf16.mxu1 %v1980_v1 }
 0x1e5   : > { %1674 = vmatpush1.bf16.msra.mxu1 %v1673_v48 }
 0x1e6   : > { %1676 = vmatprep.subr.bf16.mxu1 %v1980_v1 }
 0x1e9   : > { %1678 = vmatpush1.bf16.msra.mxu1 %v1677_v53 }
 0x1ea   : > { %1680 = vmatprep.subr.bf16.mxu1 %v1980_v1 }
 0x1ed   : > { %1682 = vmatpush1.bf16.msra.mxu1 %v1681_v56 }
 0x1ee   : > { %1684 = vmatprep.subr.bf16.mxu1 %v1683_v57 }
 0x1f1   : > { %1686 = vmatpush1.bf16.msra.mxu1 %v1980_v1  ;;  %v1045_v1 = vld [vmem:[#allocation2 + $0x3b8] sm:$0xff] }
 0x1f2   : > { %1688 = vmatprep.subr.bf16.mxu1 %v1687_v60  ;;  %v1703_v10 = vpack.c.bf16 %v1045_v1, %v1043_v8 }
 0x1f5   : > { %1690 = vmatpush1.bf16.msra.mxu1 %v2450_v28 }
 0x1f6   : > { %1692 = vmatprep.subr.bf16.mxu1 %v1691_v63 }
 0x1f9   : > { %1694 = vmatpush1.bf16.msra.mxu1 %v2450_v28 }
 0x1fa   : > { %1696 = vmatprep.subr.bf16.mxu1 %v1695_v3 }
 0x1fd   : > { %1698 = vmatpush1.bf16.msra.mxu1 %v2450_v28 }
 0x1fe   : > { %1700 = vmatprep.subr.bf16.mxu1 %v1699_v6 }
 0x201   : > { %1702 = vmatpush1.bf16.msra.mxu1 %v2450_v28 }
 0x202   : > { %1704 = vmatprep.subr.bf16.mxu1 %v1703_v10 }
 0x205   : > { %1706 = vmatpush1.bf16.msra.mxu1 %v2450_v28 }
 0x206   : > { %1708 = vmatprep.subr.bf16.mxu1 %v1707_v13 }
 0x209   : > { %1710 = vmatpush1.bf16.msra.mxu1 %v2450_v28 }
 0x20a   : > { %1712 = vmatprep.subr.bf16.mxu1 %v1711_v16 }
 0x20c   : > { %v1340_v17 = vpop.f32.mrb[2].mxu0 }
 0x20d   : > { %1714 = vmatpush1.bf16.msra.mxu1 %v2450_v28  ;;  %v1342_v18 = vpop.f32.mrb[3].mxu0  ;;  %v1572_v28 = vld [vmem:[%s2561_s1 + $0x8] sm:$0xff] }
 0x210   : > { %1119 = vmatmul.mubr.f32.vlgmr.msra.gmra.mrb[2].mxu1 %v2264_v7  ;;  %v621_v7 = vpop.permute.xlu0 %620 }
 0x211   : > { %1200 = vmatprep.mubr.f32.mxu1 %v2446_v27  ;;  %624 = vst.msk [vmem:[#allocation3] sm:$0xff] %vm623_vm5, %v621_v7  ;;  %742 = vst.msk [vmem:[#allocation3 + $0x8] sm:$0xff] %vm623_vm5, %v621_v7 }
 0x212   : > { %653 = vst.msk [vmem:[#allocation3] sm:$0xff] %vm652_vm6, %v650_v23  ;;  %749 = vst.msk [vmem:[#allocation3 + $0x8] sm:$0xff] %vm652_vm6, %v650_v23 }
 0x214   : > { %v679_v24 = vpop.permute.xlu0 %678 }
 0x215   : > { %682 = vst.msk [vmem:[#allocation3] sm:$0xff] %vm681_vm7, %v679_v24  ;;  %756 = vst.msk [vmem:[#allocation3 + $0x8] sm:$0xff] %vm681_vm7, %v679_v24 }
 0x21c   : > { %v764_v30 = vld [vmem:[#allocation3] sm:$0xff]  ;;  %v765_v31 = vld [vmem:[#allocation3 + $0x8] sm:$0xff] }
 0x2e3   : > { %v1120_v25 = vpop.f32.mrb[2].mxu1 }
 0x2e4   : > { %v1122_v26 = vpop.f32.mrb[3].mxu1 }
 0x2e5   : > { %1573 = vmatprep.subr.msk.mxu1 %vm909_vm8, %v1122_v26 }
 0x2e6   : > { %1574 = vmatpush1.msk.msra.mxu1 %vm909_vm8, %v1120_v25 }
 0x2e7   : > { %1575 = vmatmul.mubr.msk.f32.vlgmr.msra.gmra.mrb[0].mxu1 %vm905_vm9, %v1572_v28  ;;  %1577 = vmatprep.subr.msk.mxu1 %vm909_vm8, %v1342_v18 }
 0x2e8   : > { %1578 = vmatpush1.msk.msra.mxu1 %vm909_vm8, %v1340_v17  ;;  %1420 = vmatprep.mubr.f32.mxu1 %v2446_v27 }
 0x2ef   : > { %1579 = vmatmul.mubr.msk.f32.vlgmr.msra.gmra.mrb[0].mxu1 %vm905_vm9, %v1576_v29 }
 0x3c2   : > { %v1422_v32 = vpop.f32.mrb[0].mxu1 }
 0x3c3   : > { %v1779_v33 = vadd.f32 %v1422_v32, %v764_v30  ;;  %v1424_v34 = vpop.f32.mrb[1].mxu1 }
 0x3c4   : > { %v1780_v35 = vadd.f32 %v1424_v34, %v765_v31 }
 0x3c5   : > { %1429 = vst [vmem:[%s268_s9] sm:$0xff] %v1779_v33 }
 0x3c6   : > { %1430 = vst [vmem:[%s268_s9 + $0x8] sm:$0xff] %v1780_v35 }
 0x3c7   : > { %1905 = shalt.err (!%p1902_p6)
}
 0x3c8   : > { %s1906_s22 = scalar_lea.hbm %s2511_s24, 256  ;;  %s1910_s14 = scalar_lea.hbm %s2564_s4, 512 }
 0x3c9   : > { %p1907_p7 = scmp.ne.s32.totalorder %s2511_s24, %s1906_s22  ;;  %p1911_p1 = scmp.lt.u32.totalorder %s2511_s24, %s2564_s4 }
 0x3ca   : > { %p1912_p3 = scmp.lt.u32.totalorder %s1910_s14, %s1906_s22  ;;  %p1914_p9 = scmp.lt.u32.totalorder %s1906_s22, %s2511_s24 }
 0x3cb   : > { %p1908_p10 = pnand %p1907_p7, %p2575_p11 }
 0x3cc   : > { %p1913_p8 = por %p1912_p3, %p1911_p1 }
 0x3cd   : > { %p1909_p12 = pneg %p1908_p10 }
 0x3ce   : > { %p1915_p0 = por %p1914_p9, %p1913_p8 }
 0x3d0   : > { %p1916_p5 = pnand %p1915_p0, %p1909_p12 }
 0x3d2   : > { %1919 = shalt.err (!%p1916_p5)
}
 0x3d3   : > { %1790 = dma.vmem_to_hbm [thread:$0]  (%p2575_p11), %s2513_s10, 256, %s2511_s24, %s1432_s25  }
 0x3d4 PF: > { %s1460_s7 = sand.u32 1, %s1954_s15   ;;  %p2576_p13 = scmp.ne.s32.totalorder %s2571_s30, 0 }
 0x3d5   : > { %p2577_p2 = scmp.ge.s32.totalorder %s1974_s20, 2  ;;  %s1461_s9 = scalar_lea.sflag [#allocation6], %s1460_s7 }
 0x3d7   : > { %p1797_p4 = pnand %p2577_p2, %p2576_p13 }
 0x3d9   : > { %1949 = dma.done.wait (!%p1797_p4), %s1461_s9, 256  }
 0x3da   : > { %1951 = vsyncadd (!%p1797_p4), %s1461_s9, 4294967040  ;;  %s20_s20 = sadd.s32 1, %s1974_s20   ;;  %s2578_s15 = smov %s1958_s16 }
 0x3db   : > { %p17_p6 = scmp.ge.s32.totalorder %s20_s20, 4   ;;  %s2579_s16 = smov %s1962_s17 }
 0x3dc   : > { %s2580_s17 = smov %s2070_s29  ;;  %s2581_s18 = smov %s1970_s19 }
 0x3dd   : > { %s2582_s19 = smov %s2584_s23  ;;  %19 = sbr.rel (!%p17_p6) target bundleno = 6 (0x6), region = 97 }
 0x3e4   :  { %1466 = vsyncpa [#allocation5], 1 }
 0x3e5   :  { %1468 = vsyncpa [#allocation5 + $0x1], 1 }
 0x3e6   :  { %1469 = vsyncpa [#allocation6], 1 }
 0x3e7   :  { %1471 = vsyncpa [#allocation6 + $0x1], 1 }

</bundles_post_ra>
